<compile_context>
chip_gen: v5e
topology: v5e:2x2
jax: 0.10.0
libtpu: 0.0.40
codegen_flags: <defaults>
</compile_context>

<pallas_src>
import functools

import jax
import jax.numpy as jnp
from jax.experimental import pallas as pl
from jax.experimental.pallas import tpu as pltpu  # noqa: F401  (TPU backend)


def _layernorm(x, gamma, beta, eps=1e-5):
    mean = jnp.mean(x, axis=-1, keepdims=True)
    var = jnp.mean((x - mean) ** 2, axis=-1, keepdims=True)
    return (x - mean) * jax.lax.rsqrt(var + eps) * gamma + beta


def _lstm_cell(gates, c_prev, H):
    # Gate column order here is [i, f, o, g] (permuted from PyTorch's
    # [i, f, g, o] at init) so the three sigmoids are ONE contiguous,
    # lane-aligned 3H-wide activation.
    sig = jax.nn.sigmoid(gates[:, :3 * H])
    i_g = sig[:, 0 * H:1 * H]
    f_g = sig[:, 1 * H:2 * H]
    o_g = sig[:, 2 * H:3 * H]
    g_g = jnp.tanh(gates[:, 3 * H:4 * H])
    c_new = f_g * c_prev + i_g * g_g
    h_new = o_g * jnp.tanh(c_new)
    return h_new, c_new


def _forward_math(x2d, wih1, whh1, b1, w2s, b2,
                  w1, bh1, g1, bt1, w2, bh2, g2, bt2, wo, bo,
                  *, B, T, H):
    """LSTM_Net forward on plain arrays.

    Used both inside the Pallas kernel (on VMEM-loaded tiles) and as the
    pure-JAX reference, so the two paths compute identical math.
    """
    f32 = jnp.float32
    bf16 = jnp.bfloat16

    # One sequence-wide layer-1 input projection (off the serial critical
    # path); rows are time-major, so step t is a contiguous (B, 4H) slice.
    gx_all = (jnp.dot(x2d.astype(bf16), wih1, preferred_element_type=f32)
              + b1)                                            # (T*B, 4H)

    # Bias broadcast hoisted out of the unrolled recurrence.
    b2b = jnp.broadcast_to(b2, (B, 4 * H))

    h1 = jnp.zeros((B, H), f32)
    c1 = jnp.zeros((B, H), f32)
    h2 = jnp.zeros((B, H), f32)
    c2 = jnp.zeros((B, H), f32)

    # TODO(synk): PyTorch LSTM inter-layer dropout (p=0.5) is stochastic in
    # training; modeled here as eval-mode identity.
    for t in range(T):
        gates1 = (gx_all[t * B:(t + 1) * B, :]
                  + jnp.dot(h1.astype(bf16), whh1, preferred_element_type=f32))
        h1, c1 = _lstm_cell(gates1, c1, H)

        # Layer-2: both matmuls fused into one via the stacked (2H, 4H) weight.
        h12 = jnp.concatenate([h1, h2], axis=-1).astype(bf16)   # (B, 2H)
        gates2 = jnp.dot(h12, w2s, preferred_element_type=f32) + b2b
        h2, c2 = _lstm_cell(gates2, c2, H)

    # h_n stacked like torch: (num_layers * B, H), layer-major.
    hs = jnp.concatenate([h1, h2], axis=0)

    # ResNetBlock (block_layer_nums=3):
    # 2x (Linear -> LayerNorm -> ReLU -> Dropout[identity]) + residual.
    out = jnp.dot(hs.astype(bf16), w1, preferred_element_type=f32) + bh1
    out = _layernorm(out, g1, bt1)
    out = jnp.maximum(out, 0.0)
    out = jnp.dot(out.astype(bf16), w2, preferred_element_type=f32) + bh2
    out = _layernorm(out, g2, bt2)
    out = jnp.maximum(out, 0.0)
    out = hs + out

    # Final Linear (weights lane-padded to 128 columns -> lane-dense store).
    return jnp.dot(out.astype(bf16), wo, preferred_element_type=f32) + bo


def _fused_kernel(x_ref,
                  wih1_ref, whh1_ref, b1_ref,
                  w2s_ref, b2_ref,
                  w1_ref, bh1_ref, g1_ref, bt1_ref,
                  w2_ref, bh2_ref, g2_ref, bt2_ref,
                  wo_ref, bo_ref,
                  o_ref):
    H = whh1_ref.shape[0]
    B = o_ref.shape[0] // 2
    T = x_ref.shape[0] // B
    y = _forward_math(
        x_ref[...],
        wih1_ref[...], whh1_ref[...], b1_ref[...],
        w2s_ref[...], b2_ref[...],
        w1_ref[...], bh1_ref[...], g1_ref[...], bt1_ref[...],
        w2_ref[...], bh2_ref[...], g2_ref[...], bt2_ref[...],
        wo_ref[...], bo_ref[...],
        B=B, T=T, H=H)
    o_ref[...] = y.astype(o_ref.dtype)


# ----------------------------------------------------------------------------
# Parameters (matching PyTorch LSTM_Net with LSTM_layer_nums=2, hidden_nums=1,
# block_layer_nums=3), stored in kernel layout:
#   * LSTM weights transposed (in_dim, 4H); gate columns permuted to [i,f,o,g];
#     b_ih + b_hh pre-summed.
#   * Layer-2 W_ih / W_hh stacked into one (2H, 4H) matrix.
#   * Final Linear lane-padded to 128 output columns (padding is zero).
# ----------------------------------------------------------------------------
def init_params(key, input_dim, hidden_dim, output_dim):
    H = hidden_dim
    keys = jax.random.split(key, 16)
    ki = iter(keys)
    s = 1.0 / (hidden_dim ** 0.5)
    u = lambda k, shape: jax.random.uniform(k, shape, jnp.float32, -s, s)

    o_pad = max(128, ((output_dim + 127) // 128) * 128)
    wo = u(next(ki), (H, output_dim))
    bo = u(next(ki), (1, output_dim))
    return {
        # LSTM layer 1
        "wih1": u(next(ki), (input_dim, 4 * H)),
        "whh1": u(next(ki), (H, 4 * H)),
        "b1": u(next(ki), (1, 4 * H)) + u(next(ki), (1, 4 * H)),
        # LSTM layer 2 (stacked [W_ih2^T; W_hh2^T])
        "w2s": u(next(ki), (2 * H, 4 * H)),
        "b2": u(next(ki), (1, 4 * H)) + u(next(ki), (1, 4 * H)),
        # ResNetBlock (block_layer_nums=3 -> two Linear+LayerNorm stages)
        "w1": u(next(ki), (H, H)),
        "bh1": u(next(ki), (1, H)),
        "g1": jnp.ones((1, H), jnp.float32),
        "bt1": jnp.zeros((1, H), jnp.float32),
        "w2": u(next(ki), (H, H)),
        "bh2": u(next(ki), (1, H)),
        "g2": jnp.ones((1, H), jnp.float32),
        "bt2": jnp.zeros((1, H), jnp.float32),
        # Final Linear, lane-padded
        "wo_p": jnp.zeros((H, o_pad), jnp.float32).at[:, :output_dim].set(wo),
        "bo_p": jnp.zeros((1, o_pad), jnp.float32).at[:, :output_dim].set(bo),
    }


# ----------------------------------------------------------------------------
# Full model forward: x (B, T, D) batch-first -> (num_layers=2, B, output_dim)
# (torch.squeeze(h_n) is a no-op for num_layers=2, B>1).
# ----------------------------------------------------------------------------
@functools.partial(jax.jit, static_argnums=(2,))
def lstm_net_forward(x_btd, params, output_dim):
    B, T, D = x_btd.shape
    H = params["whh1"].shape[0]
    OP = params["wo_p"].shape[1]
    bf16 = jnp.bfloat16

    # Time-major rows: each step's (B, 4H) slice of the hoisted input
    # projection is a contiguous sublane range inside the kernel.
    x2d = x_btd.transpose(1, 0, 2).reshape(T * B, D).astype(jnp.float32)

    operands = (
        x2d,
        params["wih1"].astype(bf16), params["whh1"].astype(bf16), params["b1"],
        params["w2s"].astype(bf16), params["b2"],
        params["w1"].astype(bf16), params["bh1"], params["g1"], params["bt1"],
        params["w2"].astype(bf16), params["bh2"], params["g2"], params["bt2"],
        params["wo_p"].astype(bf16), params["bo_p"],
    )

    flops = 2 * (T * B * D * 4 * H                  # hoisted input projection
                 + T * B * (H + 2 * H) * 4 * H      # recurrence matmuls
                 + 2 * (2 * B) * H * H              # ResNetBlock linears
                 + (2 * B) * H * OP)                # final linear
    transcendentals = 2 * T * B * 5 * H + 4 * B
    bytes_accessed = (sum(int(a.size) * a.dtype.itemsize for a in operands)
                      + 2 * B * OP * 4)
    cost = pl.CostEstimate(flops=flops, transcendentals=transcendentals,
                           bytes_accessed=bytes_accessed)

    y_pad = pl.pallas_call(
        _fused_kernel,
        out_shape=jax.ShapeDtypeStruct((2 * B, OP), jnp.float32),
        cost_estimate=cost,
    )(*operands)

    return y_pad[:, :output_dim].reshape(2, B, output_dim)


def lstm_net_reference(x_btd, params, output_dim):
    """Pure-JAX reference using the exact same math as the kernel."""
    B, T, D = x_btd.shape
    H = params["whh1"].shape[0]
    bf16 = jnp.bfloat16
    x2d = x_btd.transpose(1, 0, 2).reshape(T * B, D).astype(jnp.float32)
    y = _forward_math(
        x2d,
        params["wih1"].astype(bf16), params["whh1"].astype(bf16), params["b1"],
        params["w2s"].astype(bf16), params["b2"],
        params["w1"].astype(bf16), params["bh1"], params["g1"], params["bt1"],
        params["w2"].astype(bf16), params["bh2"], params["g2"], params["bt2"],
        params["wo_p"].astype(bf16), params["bo_p"],
        B=B, T=T, H=H)
    return y[:, :output_dim].reshape(2, B, output_dim)


if __name__ == "__main__":
    # hyperparas = {'input_dim':21,'hidden_dim':64,'hidden_nums':1,
    #               'output_dim':3,'block_layer_nums':3,'LSTM_layer_nums':2,
    #               'dropout_rate':0.5}
    input_dim, hidden_dim, output_dim = 21, 64, 3
    B, T = 2, 8

    key = jax.random.PRNGKey(0)
    k_x, k_p = jax.random.split(key)
    x = jax.random.normal(k_x, (B, T, input_dim), jnp.float32)
    params = init_params(k_p, input_dim, hidden_dim, output_dim)

    out = lstm_net_forward(x, params, output_dim)
    out = jax.block_until_ready(out)
    assert out.shape == (2, B, output_dim), out.shape
    assert bool(jnp.all(jnp.isfinite(out)))

    ref = jax.jit(lstm_net_reference, static_argnums=(2,))(x, params, output_dim)
    ref = jax.block_until_ready(ref)
    assert bool(jnp.allclose(out, ref, atol=2e-2, rtol=2e-2)), (out, ref)

    print("KERNEL_OK")
</pallas_src>

<mosaic_0001>
module attributes {stable_mosaic.version = 11 : i64} {
  func.func @_fused_kernel(%arg0: memref<16x21xf32, #tpu.memory_space<vmem>>, %arg1: memref<21x256xbf16, #tpu.memory_space<vmem>>, %arg2: memref<64x256xbf16, #tpu.memory_space<vmem>>, %arg3: memref<1x256xf32, #tpu.memory_space<vmem>>, %arg4: memref<128x256xbf16, #tpu.memory_space<vmem>>, %arg5: memref<1x256xf32, #tpu.memory_space<vmem>>, %arg6: memref<64x64xbf16, #tpu.memory_space<vmem>>, %arg7: memref<1x64xf32, #tpu.memory_space<vmem>>, %arg8: memref<1x64xf32, #tpu.memory_space<vmem>>, %arg9: memref<1x64xf32, #tpu.memory_space<vmem>>, %arg10: memref<64x64xbf16, #tpu.memory_space<vmem>>, %arg11: memref<1x64xf32, #tpu.memory_space<vmem>>, %arg12: memref<1x64xf32, #tpu.memory_space<vmem>>, %arg13: memref<1x64xf32, #tpu.memory_space<vmem>>, %arg14: memref<64x128xbf16, #tpu.memory_space<vmem>>, %arg15: memref<1x128xf32, #tpu.memory_space<vmem>>, %arg16: memref<4x128xf32, #tpu.memory_space<vmem>>) attributes {dimension_semantics = [], scalar_prefetch = 0 : i64, scratch_operands = 0 : i64, tpu.core_type = #tpu.core_type<tc>} {
    %c0 = arith.constant 0 : index
    %c0_0 = arith.constant 0 : index
    %0 = vector.load %arg0[%c0, %c0_0] : memref<16x21xf32, #tpu.memory_space<vmem>>, vector<16x21xf32>
    %c0_1 = arith.constant 0 : index
    %c0_2 = arith.constant 0 : index
    %1 = vector.load %arg1[%c0_1, %c0_2] : memref<21x256xbf16, #tpu.memory_space<vmem>>, vector<21x256xbf16>
    %c0_3 = arith.constant 0 : index
    %c0_4 = arith.constant 0 : index
    %2 = vector.load %arg2[%c0_3, %c0_4] : memref<64x256xbf16, #tpu.memory_space<vmem>>, vector<64x256xbf16>
    %c0_5 = arith.constant 0 : index
    %c0_6 = arith.constant 0 : index
    %3 = vector.load %arg3[%c0_5, %c0_6] : memref<1x256xf32, #tpu.memory_space<vmem>>, vector<1x256xf32>
    %c0_7 = arith.constant 0 : index
    %c0_8 = arith.constant 0 : index
    %4 = vector.load %arg4[%c0_7, %c0_8] : memref<128x256xbf16, #tpu.memory_space<vmem>>, vector<128x256xbf16>
    %c0_9 = arith.constant 0 : index
    %c0_10 = arith.constant 0 : index
    %5 = vector.load %arg5[%c0_9, %c0_10] : memref<1x256xf32, #tpu.memory_space<vmem>>, vector<1x256xf32>
    %c0_11 = arith.constant 0 : index
    %c0_12 = arith.constant 0 : index
    %6 = vector.load %arg6[%c0_11, %c0_12] : memref<64x64xbf16, #tpu.memory_space<vmem>>, vector<64x64xbf16>
    %c0_13 = arith.constant 0 : index
    %c0_14 = arith.constant 0 : index
    %7 = vector.load %arg7[%c0_13, %c0_14] : memref<1x64xf32, #tpu.memory_space<vmem>>, vector<1x64xf32>
    %c0_15 = arith.constant 0 : index
    %c0_16 = arith.constant 0 : index
    %8 = vector.load %arg8[%c0_15, %c0_16] : memref<1x64xf32, #tpu.memory_space<vmem>>, vector<1x64xf32>
    %c0_17 = arith.constant 0 : index
    %c0_18 = arith.constant 0 : index
    %9 = vector.load %arg9[%c0_17, %c0_18] : memref<1x64xf32, #tpu.memory_space<vmem>>, vector<1x64xf32>
    %c0_19 = arith.constant 0 : index
    %c0_20 = arith.constant 0 : index
    %10 = vector.load %arg10[%c0_19, %c0_20] : memref<64x64xbf16, #tpu.memory_space<vmem>>, vector<64x64xbf16>
    %c0_21 = arith.constant 0 : index
    %c0_22 = arith.constant 0 : index
    %11 = vector.load %arg11[%c0_21, %c0_22] : memref<1x64xf32, #tpu.memory_space<vmem>>, vector<1x64xf32>
    %c0_23 = arith.constant 0 : index
    %c0_24 = arith.constant 0 : index
    %12 = vector.load %arg12[%c0_23, %c0_24] : memref<1x64xf32, #tpu.memory_space<vmem>>, vector<1x64xf32>
    %c0_25 = arith.constant 0 : index
    %c0_26 = arith.constant 0 : index
    %13 = vector.load %arg13[%c0_25, %c0_26] : memref<1x64xf32, #tpu.memory_space<vmem>>, vector<1x64xf32>
    %c0_27 = arith.constant 0 : index
    %c0_28 = arith.constant 0 : index
    %14 = vector.load %arg14[%c0_27, %c0_28] : memref<64x128xbf16, #tpu.memory_space<vmem>>, vector<64x128xbf16>
    %c0_29 = arith.constant 0 : index
    %c0_30 = arith.constant 0 : index
    %15 = vector.load %arg15[%c0_29, %c0_30] : memref<1x128xf32, #tpu.memory_space<vmem>>, vector<1x128xf32>
    %16 = arith.truncf %0 : vector<16x21xf32> to vector<16x21xbf16>
    %cst = arith.constant dense<0.000000e+00> : vector<16x256xf32>
    %17 = tpu.matmul %16, %1, %cst {dimension_numbers = #tpu.dot_dimension_numbers<[1], [0], [0], [1], [0, 0, 1, 1], [], []>} : vector<16x21xbf16>, vector<21x256xbf16>, vector<16x256xf32> -> vector<16x256xf32>
    %18 = vector.broadcast %3 : vector<1x256xf32> to vector<16x256xf32>
    %19 = arith.addf %17, %18 : vector<16x256xf32>
    %20 = vector.shape_cast %5 : vector<1x256xf32> to vector<1x256xf32>
    %21 = vector.broadcast %20 : vector<1x256xf32> to vector<2x256xf32>
    %cst_31 = arith.constant 0.000000e+00 : f32
    %22 = vector.broadcast %cst_31 : f32 to vector<2x64xf32>
    %cst_32 = arith.constant 0.000000e+00 : f32
    %23 = vector.broadcast %cst_32 : f32 to vector<2x64xf32>
    %cst_33 = arith.constant 0.000000e+00 : f32
    %24 = vector.broadcast %cst_33 : f32 to vector<2x64xf32>
    %cst_34 = arith.constant 0.000000e+00 : f32
    %25 = vector.broadcast %cst_34 : f32 to vector<2x64xf32>
    %26 = vector.extract_strided_slice %19 {offsets = [0, 0], sizes = [2, 256], strides = [1, 1]} : vector<16x256xf32> to vector<2x256xf32>
    %27 = arith.truncf %22 : vector<2x64xf32> to vector<2x64xbf16>
    %cst_35 = arith.constant dense<0.000000e+00> : vector<2x256xf32>
    %28 = tpu.matmul %27, %2, %cst_35 {dimension_numbers = #tpu.dot_dimension_numbers<[1], [0], [0], [1], [0, 0, 1, 1], [], []>} : vector<2x64xbf16>, vector<64x256xbf16>, vector<2x256xf32> -> vector<2x256xf32>
    %29 = arith.addf %26, %28 : vector<2x256xf32>
    %30 = vector.extract_strided_slice %29 {offsets = [0, 0], sizes = [2, 192], strides = [1, 1]} : vector<2x256xf32> to vector<2x192xf32>
    %31 = arith.negf %30 : vector<2x192xf32>
    %32 = math.exp %31 : vector<2x192xf32>
    %cst_36 = arith.constant 1.000000e+00 : f32
    %33 = vector.broadcast %cst_36 : f32 to vector<2x192xf32>
    %34 = arith.addf %33, %32 : vector<2x192xf32>
    %35 = arith.divf %33, %34 : vector<2x192xf32>
    %36 = vector.extract_strided_slice %35 {offsets = [0, 0], sizes = [2, 64], strides = [1, 1]} : vector<2x192xf32> to vector<2x64xf32>
    %37 = vector.extract_strided_slice %35 {offsets = [0, 64], sizes = [2, 64], strides = [1, 1]} : vector<2x192xf32> to vector<2x64xf32>
    %38 = vector.extract_strided_slice %35 {offsets = [0, 128], sizes = [2, 64], strides = [1, 1]} : vector<2x192xf32> to vector<2x64xf32>
    %39 = vector.extract_strided_slice %29 {offsets = [0, 192], sizes = [2, 64], strides = [1, 1]} : vector<2x256xf32> to vector<2x64xf32>
    %40 = math.tanh %39 : vector<2x64xf32>
    %41 = arith.mulf %37, %23 : vector<2x64xf32>
    %42 = arith.mulf %36, %40 : vector<2x64xf32>
    %43 = arith.addf %41, %42 : vector<2x64xf32>
    %44 = math.tanh %43 : vector<2x64xf32>
    %45 = arith.mulf %38, %44 : vector<2x64xf32>
    %46 = tpu.concatenate %45, %24 in 1 : vector<2x64xf32>, vector<2x64xf32> -> vector<2x128xf32>
    %47 = arith.truncf %46 : vector<2x128xf32> to vector<2x128xbf16>
    %cst_37 = arith.constant dense<0.000000e+00> : vector<2x256xf32>
    %48 = tpu.matmul %47, %4, %cst_37 {dimension_numbers = #tpu.dot_dimension_numbers<[1], [0], [0], [1], [0, 0, 1, 1], [], []>} : vector<2x128xbf16>, vector<128x256xbf16>, vector<2x256xf32> -> vector<2x256xf32>
    %49 = arith.addf %48, %21 : vector<2x256xf32>
    %50 = vector.extract_strided_slice %49 {offsets = [0, 0], sizes = [2, 192], strides = [1, 1]} : vector<2x256xf32> to vector<2x192xf32>
    %51 = arith.negf %50 : vector<2x192xf32>
    %52 = math.exp %51 : vector<2x192xf32>
    %cst_38 = arith.constant 1.000000e+00 : f32
    %53 = vector.broadcast %cst_38 : f32 to vector<2x192xf32>
    %54 = arith.addf %53, %52 : vector<2x192xf32>
    %55 = arith.divf %53, %54 : vector<2x192xf32>
    %56 = vector.extract_strided_slice %55 {offsets = [0, 0], sizes = [2, 64], strides = [1, 1]} : vector<2x192xf32> to vector<2x64xf32>
    %57 = vector.extract_strided_slice %55 {offsets = [0, 64], sizes = [2, 64], strides = [1, 1]} : vector<2x192xf32> to vector<2x64xf32>
    %58 = vector.extract_strided_slice %55 {offsets = [0, 128], sizes = [2, 64], strides = [1, 1]} : vector<2x192xf32> to vector<2x64xf32>
    %59 = vector.extract_strided_slice %49 {offsets = [0, 192], sizes = [2, 64], strides = [1, 1]} : vector<2x256xf32> to vector<2x64xf32>
    %60 = math.tanh %59 : vector<2x64xf32>
    %61 = arith.mulf %57, %25 : vector<2x64xf32>
    %62 = arith.mulf %56, %60 : vector<2x64xf32>
    %63 = arith.addf %61, %62 : vector<2x64xf32>
    %64 = math.tanh %63 : vector<2x64xf32>
    %65 = arith.mulf %58, %64 : vector<2x64xf32>
    %66 = vector.extract_strided_slice %19 {offsets = [2, 0], sizes = [2, 256], strides = [1, 1]} : vector<16x256xf32> to vector<2x256xf32>
    %67 = arith.truncf %45 : vector<2x64xf32> to vector<2x64xbf16>
    %cst_39 = arith.constant dense<0.000000e+00> : vector<2x256xf32>
    %68 = tpu.matmul %67, %2, %cst_39 {dimension_numbers = #tpu.dot_dimension_numbers<[1], [0], [0], [1], [0, 0, 1, 1], [], []>} : vector<2x64xbf16>, vector<64x256xbf16>, vector<2x256xf32> -> vector<2x256xf32>
    %69 = arith.addf %66, %68 : vector<2x256xf32>
    %70 = vector.extract_strided_slice %69 {offsets = [0, 0], sizes = [2, 192], strides = [1, 1]} : vector<2x256xf32> to vector<2x192xf32>
    %71 = arith.negf %70 : vector<2x192xf32>
    %72 = math.exp %71 : vector<2x192xf32>
    %cst_40 = arith.constant 1.000000e+00 : f32
    %73 = vector.broadcast %cst_40 : f32 to vector<2x192xf32>
    %74 = arith.addf %73, %72 : vector<2x192xf32>
    %75 = arith.divf %73, %74 : vector<2x192xf32>
    %76 = vector.extract_strided_slice %75 {offsets = [0, 0], sizes = [2, 64], strides = [1, 1]} : vector<2x192xf32> to vector<2x64xf32>
    %77 = vector.extract_strided_slice %75 {offsets = [0, 64], sizes = [2, 64], strides = [1, 1]} : vector<2x192xf32> to vector<2x64xf32>
    %78 = vector.extract_strided_slice %75 {offsets = [0, 128], sizes = [2, 64], strides = [1, 1]} : vector<2x192xf32> to vector<2x64xf32>
    %79 = vector.extract_strided_slice %69 {offsets = [0, 192], sizes = [2, 64], strides = [1, 1]} : vector<2x256xf32> to vector<2x64xf32>
    %80 = math.tanh %79 : vector<2x64xf32>
    %81 = arith.mulf %77, %43 : vector<2x64xf32>
    %82 = arith.mulf %76, %80 : vector<2x64xf32>
    %83 = arith.addf %81, %82 : vector<2x64xf32>
    %84 = math.tanh %83 : vector<2x64xf32>
    %85 = arith.mulf %78, %84 : vector<2x64xf32>
    %86 = tpu.concatenate %85, %65 in 1 : vector<2x64xf32>, vector<2x64xf32> -> vector<2x128xf32>
    %87 = arith.truncf %86 : vector<2x128xf32> to vector<2x128xbf16>
    %cst_41 = arith.constant dense<0.000000e+00> : vector<2x256xf32>
    %88 = tpu.matmul %87, %4, %cst_41 {dimension_numbers = #tpu.dot_dimension_numbers<[1], [0], [0], [1], [0, 0, 1, 1], [], []>} : vector<2x128xbf16>, vector<128x256xbf16>, vector<2x256xf32> -> vector<2x256xf32>
    %89 = arith.addf %88, %21 : vector<2x256xf32>
    %90 = vector.extract_strided_slice %89 {offsets = [0, 0], sizes = [2, 192], strides = [1, 1]} : vector<2x256xf32> to vector<2x192xf32>
    %91 = arith.negf %90 : vector<2x192xf32>
    %92 = math.exp %91 : vector<2x192xf32>
    %cst_42 = arith.constant 1.000000e+00 : f32
    %93 = vector.broadcast %cst_42 : f32 to vector<2x192xf32>
    %94 = arith.addf %93, %92 : vector<2x192xf32>
    %95 = arith.divf %93, %94 : vector<2x192xf32>
    %96 = vector.extract_strided_slice %95 {offsets = [0, 0], sizes = [2, 64], strides = [1, 1]} : vector<2x192xf32> to vector<2x64xf32>
    %97 = vector.extract_strided_slice %95 {offsets = [0, 64], sizes = [2, 64], strides = [1, 1]} : vector<2x192xf32> to vector<2x64xf32>
    %98 = vector.extract_strided_slice %95 {offsets = [0, 128], sizes = [2, 64], strides = [1, 1]} : vector<2x192xf32> to vector<2x64xf32>
    %99 = vector.extract_strided_slice %89 {offsets = [0, 192], sizes = [2, 64], strides = [1, 1]} : vector<2x256xf32> to vector<2x64xf32>
    %100 = math.tanh %99 : vector<2x64xf32>
    %101 = arith.mulf %97, %63 : vector<2x64xf32>
    %102 = arith.mulf %96, %100 : vector<2x64xf32>
    %103 = arith.addf %101, %102 : vector<2x64xf32>
    %104 = math.tanh %103 : vector<2x64xf32>
    %105 = arith.mulf %98, %104 : vector<2x64xf32>
    %106 = vector.extract_strided_slice %19 {offsets = [4, 0], sizes = [2, 256], strides = [1, 1]} : vector<16x256xf32> to vector<2x256xf32>
    %107 = arith.truncf %85 : vector<2x64xf32> to vector<2x64xbf16>
    %cst_43 = arith.constant dense<0.000000e+00> : vector<2x256xf32>
    %108 = tpu.matmul %107, %2, %cst_43 {dimension_numbers = #tpu.dot_dimension_numbers<[1], [0], [0], [1], [0, 0, 1, 1], [], []>} : vector<2x64xbf16>, vector<64x256xbf16>, vector<2x256xf32> -> vector<2x256xf32>
    %109 = arith.addf %106, %108 : vector<2x256xf32>
    %110 = vector.extract_strided_slice %109 {offsets = [0, 0], sizes = [2, 192], strides = [1, 1]} : vector<2x256xf32> to vector<2x192xf32>
    %111 = arith.negf %110 : vector<2x192xf32>
    %112 = math.exp %111 : vector<2x192xf32>
    %cst_44 = arith.constant 1.000000e+00 : f32
    %113 = vector.broadcast %cst_44 : f32 to vector<2x192xf32>
    %114 = arith.addf %113, %112 : vector<2x192xf32>
    %115 = arith.divf %113, %114 : vector<2x192xf32>
    %116 = vector.extract_strided_slice %115 {offsets = [0, 0], sizes = [2, 64], strides = [1, 1]} : vector<2x192xf32> to vector<2x64xf32>
    %117 = vector.extract_strided_slice %115 {offsets = [0, 64], sizes = [2, 64], strides = [1, 1]} : vector<2x192xf32> to vector<2x64xf32>
    %118 = vector.extract_strided_slice %115 {offsets = [0, 128], sizes = [2, 64], strides = [1, 1]} : vector<2x192xf32> to vector<2x64xf32>
    %119 = vector.extract_strided_slice %109 {offsets = [0, 192], sizes = [2, 64], strides = [1, 1]} : vector<2x256xf32> to vector<2x64xf32>
    %120 = math.tanh %119 : vector<2x64xf32>
    %121 = arith.mulf %117, %83 : vector<2x64xf32>
    %122 = arith.mulf %116, %120 : vector<2x64xf32>
    %123 = arith.addf %121, %122 : vector<2x64xf32>
    %124 = math.tanh %123 : vector<2x64xf32>
    %125 = arith.mulf %118, %124 : vector<2x64xf32>
    %126 = tpu.concatenate %125, %105 in 1 : vector<2x64xf32>, vector<2x64xf32> -> vector<2x128xf32>
    %127 = arith.truncf %126 : vector<2x128xf32> to vector<2x128xbf16>
    %cst_45 = arith.constant dense<0.000000e+00> : vector<2x256xf32>
    %128 = tpu.matmul %127, %4, %cst_45 {dimension_numbers = #tpu.dot_dimension_numbers<[1], [0], [0], [1], [0, 0, 1, 1], [], []>} : vector<2x128xbf16>, vector<128x256xbf16>, vector<2x256xf32> -> vector<2x256xf32>
    %129 = arith.addf %128, %21 : vector<2x256xf32>
    %130 = vector.extract_strided_slice %129 {offsets = [0, 0], sizes = [2, 192], strides = [1, 1]} : vector<2x256xf32> to vector<2x192xf32>
    %131 = arith.negf %130 : vector<2x192xf32>
    %132 = math.exp %131 : vector<2x192xf32>
    %cst_46 = arith.constant 1.000000e+00 : f32
    %133 = vector.broadcast %cst_46 : f32 to vector<2x192xf32>
    %134 = arith.addf %133, %132 : vector<2x192xf32>
    %135 = arith.divf %133, %134 : vector<2x192xf32>
    %136 = vector.extract_strided_slice %135 {offsets = [0, 0], sizes = [2, 64], strides = [1, 1]} : vector<2x192xf32> to vector<2x64xf32>
    %137 = vector.extract_strided_slice %135 {offsets = [0, 64], sizes = [2, 64], strides = [1, 1]} : vector<2x192xf32> to vector<2x64xf32>
    %138 = vector.extract_strided_slice %135 {offsets = [0, 128], sizes = [2, 64], strides = [1, 1]} : vector<2x192xf32> to vector<2x64xf32>
    %139 = vector.extract_strided_slice %129 {offsets = [0, 192], sizes = [2, 64], strides = [1, 1]} : vector<2x256xf32> to vector<2x64xf32>
    %140 = math.tanh %139 : vector<2x64xf32>
    %141 = arith.mulf %137, %103 : vector<2x64xf32>
    %142 = arith.mulf %136, %140 : vector<2x64xf32>
    %143 = arith.addf %141, %142 : vector<2x64xf32>
    %144 = math.tanh %143 : vector<2x64xf32>
    %145 = arith.mulf %138, %144 : vector<2x64xf32>
    %146 = vector.extract_strided_slice %19 {offsets = [6, 0], sizes = [2, 256], strides = [1, 1]} : vector<16x256xf32> to vector<2x256xf32>
    %147 = arith.truncf %125 : vector<2x64xf32> to vector<2x64xbf16>
    %cst_47 = arith.constant dense<0.000000e+00> : vector<2x256xf32>
    %148 = tpu.matmul %147, %2, %cst_47 {dimension_numbers = #tpu.dot_dimension_numbers<[1], [0], [0], [1], [0, 0, 1, 1], [], []>} : vector<2x64xbf16>, vector<64x256xbf16>, vector<2x256xf32> -> vector<2x256xf32>
    %149 = arith.addf %146, %148 : vector<2x256xf32>
    %150 = vector.extract_strided_slice %149 {offsets = [0, 0], sizes = [2, 192], strides = [1, 1]} : vector<2x256xf32> to vector<2x192xf32>
    %151 = arith.negf %150 : vector<2x192xf32>
    %152 = math.exp %151 : vector<2x192xf32>
    %cst_48 = arith.constant 1.000000e+00 : f32
    %153 = vector.broadcast %cst_48 : f32 to vector<2x192xf32>
    %154 = arith.addf %153, %152 : vector<2x192xf32>
    %155 = arith.divf %153, %154 : vector<2x192xf32>
    %156 = vector.extract_strided_slice %155 {offsets = [0, 0], sizes = [2, 64], strides = [1, 1]} : vector<2x192xf32> to vector<2x64xf32>
    %157 = vector.extract_strided_slice %155 {offsets = [0, 64], sizes = [2, 64], strides = [1, 1]} : vector<2x192xf32> to vector<2x64xf32>
    %158 = vector.extract_strided_slice %155 {offsets = [0, 128], sizes = [2, 64], strides = [1, 1]} : vector<2x192xf32> to vector<2x64xf32>
    %159 = vector.extract_strided_slice %149 {offsets = [0, 192], sizes = [2, 64], strides = [1, 1]} : vector<2x256xf32> to vector<2x64xf32>
    %160 = math.tanh %159 : vector<2x64xf32>
    %161 = arith.mulf %157, %123 : vector<2x64xf32>
    %162 = arith.mulf %156, %160 : vector<2x64xf32>
    %163 = arith.addf %161, %162 : vector<2x64xf32>
    %164 = math.tanh %163 : vector<2x64xf32>
    %165 = arith.mulf %158, %164 : vector<2x64xf32>
    %166 = tpu.concatenate %165, %145 in 1 : vector<2x64xf32>, vector<2x64xf32> -> vector<2x128xf32>
    %167 = arith.truncf %166 : vector<2x128xf32> to vector<2x128xbf16>
    %cst_49 = arith.constant dense<0.000000e+00> : vector<2x256xf32>
    %168 = tpu.matmul %167, %4, %cst_49 {dimension_numbers = #tpu.dot_dimension_numbers<[1], [0], [0], [1], [0, 0, 1, 1], [], []>} : vector<2x128xbf16>, vector<128x256xbf16>, vector<2x256xf32> -> vector<2x256xf32>
    %169 = arith.addf %168, %21 : vector<2x256xf32>
    %170 = vector.extract_strided_slice %169 {offsets = [0, 0], sizes = [2, 192], strides = [1, 1]} : vector<2x256xf32> to vector<2x192xf32>
    %171 = arith.negf %170 : vector<2x192xf32>
    %172 = math.exp %171 : vector<2x192xf32>
    %cst_50 = arith.constant 1.000000e+00 : f32
    %173 = vector.broadcast %cst_50 : f32 to vector<2x192xf32>
    %174 = arith.addf %173, %172 : vector<2x192xf32>
    %175 = arith.divf %173, %174 : vector<2x192xf32>
    %176 = vector.extract_strided_slice %175 {offsets = [0, 0], sizes = [2, 64], strides = [1, 1]} : vector<2x192xf32> to vector<2x64xf32>
    %177 = vector.extract_strided_slice %175 {offsets = [0, 64], sizes = [2, 64], strides = [1, 1]} : vector<2x192xf32> to vector<2x64xf32>
    %178 = vector.extract_strided_slice %175 {offsets = [0, 128], sizes = [2, 64], strides = [1, 1]} : vector<2x192xf32> to vector<2x64xf32>
    %179 = vector.extract_strided_slice %169 {offsets = [0, 192], sizes = [2, 64], strides = [1, 1]} : vector<2x256xf32> to vector<2x64xf32>
    %180 = math.tanh %179 : vector<2x64xf32>
    %181 = arith.mulf %177, %143 : vector<2x64xf32>
    %182 = arith.mulf %176, %180 : vector<2x64xf32>
    %183 = arith.addf %181, %182 : vector<2x64xf32>
    %184 = math.tanh %183 : vector<2x64xf32>
    %185 = arith.mulf %178, %184 : vector<2x64xf32>
    %186 = vector.extract_strided_slice %19 {offsets = [8, 0], sizes = [2, 256], strides = [1, 1]} : vector<16x256xf32> to vector<2x256xf32>
    %187 = arith.truncf %165 : vector<2x64xf32> to vector<2x64xbf16>
    %cst_51 = arith.constant dense<0.000000e+00> : vector<2x256xf32>
    %188 = tpu.matmul %187, %2, %cst_51 {dimension_numbers = #tpu.dot_dimension_numbers<[1], [0], [0], [1], [0, 0, 1, 1], [], []>} : vector<2x64xbf16>, vector<64x256xbf16>, vector<2x256xf32> -> vector<2x256xf32>
    %189 = arith.addf %186, %188 : vector<2x256xf32>
    %190 = vector.extract_strided_slice %189 {offsets = [0, 0], sizes = [2, 192], strides = [1, 1]} : vector<2x256xf32> to vector<2x192xf32>
    %191 = arith.negf %190 : vector<2x192xf32>
    %192 = math.exp %191 : vector<2x192xf32>
    %cst_52 = arith.constant 1.000000e+00 : f32
    %193 = vector.broadcast %cst_52 : f32 to vector<2x192xf32>
    %194 = arith.addf %193, %192 : vector<2x192xf32>
    %195 = arith.divf %193, %194 : vector<2x192xf32>
    %196 = vector.extract_strided_slice %195 {offsets = [0, 0], sizes = [2, 64], strides = [1, 1]} : vector<2x192xf32> to vector<2x64xf32>
    %197 = vector.extract_strided_slice %195 {offsets = [0, 64], sizes = [2, 64], strides = [1, 1]} : vector<2x192xf32> to vector<2x64xf32>
    %198 = vector.extract_strided_slice %195 {offsets = [0, 128], sizes = [2, 64], strides = [1, 1]} : vector<2x192xf32> to vector<2x64xf32>
    %199 = vector.extract_strided_slice %189 {offsets = [0, 192], sizes = [2, 64], strides = [1, 1]} : vector<2x256xf32> to vector<2x64xf32>
    %200 = math.tanh %199 : vector<2x64xf32>
    %201 = arith.mulf %197, %163 : vector<2x64xf32>
    %202 = arith.mulf %196, %200 : vector<2x64xf32>
    %203 = arith.addf %201, %202 : vector<2x64xf32>
    %204 = math.tanh %203 : vector<2x64xf32>
    %205 = arith.mulf %198, %204 : vector<2x64xf32>
    %206 = tpu.concatenate %205, %185 in 1 : vector<2x64xf32>, vector<2x64xf32> -> vector<2x128xf32>
    %207 = arith.truncf %206 : vector<2x128xf32> to vector<2x128xbf16>
    %cst_53 = arith.constant dense<0.000000e+00> : vector<2x256xf32>
    %208 = tpu.matmul %207, %4, %cst_53 {dimension_numbers = #tpu.dot_dimension_numbers<[1], [0], [0], [1], [0, 0, 1, 1], [], []>} : vector<2x128xbf16>, vector<128x256xbf16>, vector<2x256xf32> -> vector<2x256xf32>
    %209 = arith.addf %208, %21 : vector<2x256xf32>
    %210 = vector.extract_strided_slice %209 {offsets = [0, 0], sizes = [2, 192], strides = [1, 1]} : vector<2x256xf32> to vector<2x192xf32>
    %211 = arith.negf %210 : vector<2x192xf32>
    %212 = math.exp %211 : vector<2x192xf32>
    %cst_54 = arith.constant 1.000000e+00 : f32
    %213 = vector.broadcast %cst_54 : f32 to vector<2x192xf32>
    %214 = arith.addf %213, %212 : vector<2x192xf32>
    %215 = arith.divf %213, %214 : vector<2x192xf32>
    %216 = vector.extract_strided_slice %215 {offsets = [0, 0], sizes = [2, 64], strides = [1, 1]} : vector<2x192xf32> to vector<2x64xf32>
    %217 = vector.extract_strided_slice %215 {offsets = [0, 64], sizes = [2, 64], strides = [1, 1]} : vector<2x192xf32> to vector<2x64xf32>
    %218 = vector.extract_strided_slice %215 {offsets = [0, 128], sizes = [2, 64], strides = [1, 1]} : vector<2x192xf32> to vector<2x64xf32>
    %219 = vector.extract_strided_slice %209 {offsets = [0, 192], sizes = [2, 64], strides = [1, 1]} : vector<2x256xf32> to vector<2x64xf32>
    %220 = math.tanh %219 : vector<2x64xf32>
    %221 = arith.mulf %217, %183 : vector<2x64xf32>
    %222 = arith.mulf %216, %220 : vector<2x64xf32>
    %223 = arith.addf %221, %222 : vector<2x64xf32>
    %224 = math.tanh %223 : vector<2x64xf32>
    %225 = arith.mulf %218, %224 : vector<2x64xf32>
    %226 = vector.extract_strided_slice %19 {offsets = [10, 0], sizes = [2, 256], strides = [1, 1]} : vector<16x256xf32> to vector<2x256xf32>
    %227 = arith.truncf %205 : vector<2x64xf32> to vector<2x64xbf16>
    %cst_55 = arith.constant dense<0.000000e+00> : vector<2x256xf32>
    %228 = tpu.matmul %227, %2, %cst_55 {dimension_numbers = #tpu.dot_dimension_numbers<[1], [0], [0], [1], [0, 0, 1, 1], [], []>} : vector<2x64xbf16>, vector<64x256xbf16>, vector<2x256xf32> -> vector<2x256xf32>
    %229 = arith.addf %226, %228 : vector<2x256xf32>
    %230 = vector.extract_strided_slice %229 {offsets = [0, 0], sizes = [2, 192], strides = [1, 1]} : vector<2x256xf32> to vector<2x192xf32>
    %231 = arith.negf %230 : vector<2x192xf32>
    %232 = math.exp %231 : vector<2x192xf32>
    %cst_56 = arith.constant 1.000000e+00 : f32
    %233 = vector.broadcast %cst_56 : f32 to vector<2x192xf32>
    %234 = arith.addf %233, %232 : vector<2x192xf32>
    %235 = arith.divf %233, %234 : vector<2x192xf32>
    %236 = vector.extract_strided_slice %235 {offsets = [0, 0], sizes = [2, 64], strides = [1, 1]} : vector<2x192xf32> to vector<2x64xf32>
    %237 = vector.extract_strided_slice %235 {offsets = [0, 64], sizes = [2, 64], strides = [1, 1]} : vector<2x192xf32> to vector<2x64xf32>
    %238 = vector.extract_strided_slice %235 {offsets = [0, 128], sizes = [2, 64], strides = [1, 1]} : vector<2x192xf32> to vector<2x64xf32>
    %239 = vector.extract_strided_slice %229 {offsets = [0, 192], sizes = [2, 64], strides = [1, 1]} : vector<2x256xf32> to vector<2x64xf32>
    %240 = math.tanh %239 : vector<2x64xf32>
    %241 = arith.mulf %237, %203 : vector<2x64xf32>
    %242 = arith.mulf %236, %240 : vector<2x64xf32>
    %243 = arith.addf %241, %242 : vector<2x64xf32>
    %244 = math.tanh %243 : vector<2x64xf32>
    %245 = arith.mulf %238, %244 : vector<2x64xf32>
    %246 = tpu.concatenate %245, %225 in 1 : vector<2x64xf32>, vector<2x64xf32> -> vector<2x128xf32>
    %247 = arith.truncf %246 : vector<2x128xf32> to vector<2x128xbf16>
    %cst_57 = arith.constant dense<0.000000e+00> : vector<2x256xf32>
    %248 = tpu.matmul %247, %4, %cst_57 {dimension_numbers = #tpu.dot_dimension_numbers<[1], [0], [0], [1], [0, 0, 1, 1], [], []>} : vector<2x128xbf16>, vector<128x256xbf16>, vector<2x256xf32> -> vector<2x256xf32>
    %249 = arith.addf %248, %21 : vector<2x256xf32>
    %250 = vector.extract_strided_slice %249 {offsets = [0, 0], sizes = [2, 192], strides = [1, 1]} : vector<2x256xf32> to vector<2x192xf32>
    %251 = arith.negf %250 : vector<2x192xf32>
    %252 = math.exp %251 : vector<2x192xf32>
    %cst_58 = arith.constant 1.000000e+00 : f32
    %253 = vector.broadcast %cst_58 : f32 to vector<2x192xf32>
    %254 = arith.addf %253, %252 : vector<2x192xf32>
    %255 = arith.divf %253, %254 : vector<2x192xf32>
    %256 = vector.extract_strided_slice %255 {offsets = [0, 0], sizes = [2, 64], strides = [1, 1]} : vector<2x192xf32> to vector<2x64xf32>
    %257 = vector.extract_strided_slice %255 {offsets = [0, 64], sizes = [2, 64], strides = [1, 1]} : vector<2x192xf32> to vector<2x64xf32>
    %258 = vector.extract_strided_slice %255 {offsets = [0, 128], sizes = [2, 64], strides = [1, 1]} : vector<2x192xf32> to vector<2x64xf32>
    %259 = vector.extract_strided_slice %249 {offsets = [0, 192], sizes = [2, 64], strides = [1, 1]} : vector<2x256xf32> to vector<2x64xf32>
    %260 = math.tanh %259 : vector<2x64xf32>
    %261 = arith.mulf %257, %223 : vector<2x64xf32>
    %262 = arith.mulf %256, %260 : vector<2x64xf32>
    %263 = arith.addf %261, %262 : vector<2x64xf32>
    %264 = math.tanh %263 : vector<2x64xf32>
    %265 = arith.mulf %258, %264 : vector<2x64xf32>
    %266 = vector.extract_strided_slice %19 {offsets = [12, 0], sizes = [2, 256], strides = [1, 1]} : vector<16x256xf32> to vector<2x256xf32>
    %267 = arith.truncf %245 : vector<2x64xf32> to vector<2x64xbf16>
    %cst_59 = arith.constant dense<0.000000e+00> : vector<2x256xf32>
    %268 = tpu.matmul %267, %2, %cst_59 {dimension_numbers = #tpu.dot_dimension_numbers<[1], [0], [0], [1], [0, 0, 1, 1], [], []>} : vector<2x64xbf16>, vector<64x256xbf16>, vector<2x256xf32> -> vector<2x256xf32>
    %269 = arith.addf %266, %268 : vector<2x256xf32>
    %270 = vector.extract_strided_slice %269 {offsets = [0, 0], sizes = [2, 192], strides = [1, 1]} : vector<2x256xf32> to vector<2x192xf32>
    %271 = arith.negf %270 : vector<2x192xf32>
    %272 = math.exp %271 : vector<2x192xf32>
    %cst_60 = arith.constant 1.000000e+00 : f32
    %273 = vector.broadcast %cst_60 : f32 to vector<2x192xf32>
    %274 = arith.addf %273, %272 : vector<2x192xf32>
    %275 = arith.divf %273, %274 : vector<2x192xf32>
    %276 = vector.extract_strided_slice %275 {offsets = [0, 0], sizes = [2, 64], strides = [1, 1]} : vector<2x192xf32> to vector<2x64xf32>
    %277 = vector.extract_strided_slice %275 {offsets = [0, 64], sizes = [2, 64], strides = [1, 1]} : vector<2x192xf32> to vector<2x64xf32>
    %278 = vector.extract_strided_slice %275 {offsets = [0, 128], sizes = [2, 64], strides = [1, 1]} : vector<2x192xf32> to vector<2x64xf32>
    %279 = vector.extract_strided_slice %269 {offsets = [0, 192], sizes = [2, 64], strides = [1, 1]} : vector<2x256xf32> to vector<2x64xf32>
    %280 = math.tanh %279 : vector<2x64xf32>
    %281 = arith.mulf %277, %243 : vector<2x64xf32>
    %282 = arith.mulf %276, %280 : vector<2x64xf32>
    %283 = arith.addf %281, %282 : vector<2x64xf32>
    %284 = math.tanh %283 : vector<2x64xf32>
    %285 = arith.mulf %278, %284 : vector<2x64xf32>
    %286 = tpu.concatenate %285, %265 in 1 : vector<2x64xf32>, vector<2x64xf32> -> vector<2x128xf32>
    %287 = arith.truncf %286 : vector<2x128xf32> to vector<2x128xbf16>
    %cst_61 = arith.constant dense<0.000000e+00> : vector<2x256xf32>
    %288 = tpu.matmul %287, %4, %cst_61 {dimension_numbers = #tpu.dot_dimension_numbers<[1], [0], [0], [1], [0, 0, 1, 1], [], []>} : vector<2x128xbf16>, vector<128x256xbf16>, vector<2x256xf32> -> vector<2x256xf32>
    %289 = arith.addf %288, %21 : vector<2x256xf32>
    %290 = vector.extract_strided_slice %289 {offsets = [0, 0], sizes = [2, 192], strides = [1, 1]} : vector<2x256xf32> to vector<2x192xf32>
    %291 = arith.negf %290 : vector<2x192xf32>
    %292 = math.exp %291 : vector<2x192xf32>
    %cst_62 = arith.constant 1.000000e+00 : f32
    %293 = vector.broadcast %cst_62 : f32 to vector<2x192xf32>
    %294 = arith.addf %293, %292 : vector<2x192xf32>
    %295 = arith.divf %293, %294 : vector<2x192xf32>
    %296 = vector.extract_strided_slice %295 {offsets = [0, 0], sizes = [2, 64], strides = [1, 1]} : vector<2x192xf32> to vector<2x64xf32>
    %297 = vector.extract_strided_slice %295 {offsets = [0, 64], sizes = [2, 64], strides = [1, 1]} : vector<2x192xf32> to vector<2x64xf32>
    %298 = vector.extract_strided_slice %295 {offsets = [0, 128], sizes = [2, 64], strides = [1, 1]} : vector<2x192xf32> to vector<2x64xf32>
    %299 = vector.extract_strided_slice %289 {offsets = [0, 192], sizes = [2, 64], strides = [1, 1]} : vector<2x256xf32> to vector<2x64xf32>
    %300 = math.tanh %299 : vector<2x64xf32>
    %301 = arith.mulf %297, %263 : vector<2x64xf32>
    %302 = arith.mulf %296, %300 : vector<2x64xf32>
    %303 = arith.addf %301, %302 : vector<2x64xf32>
    %304 = math.tanh %303 : vector<2x64xf32>
    %305 = arith.mulf %298, %304 : vector<2x64xf32>
    %306 = vector.extract_strided_slice %19 {offsets = [14, 0], sizes = [2, 256], strides = [1, 1]} : vector<16x256xf32> to vector<2x256xf32>
    %307 = arith.truncf %285 : vector<2x64xf32> to vector<2x64xbf16>
    %cst_63 = arith.constant dense<0.000000e+00> : vector<2x256xf32>
    %308 = tpu.matmul %307, %2, %cst_63 {dimension_numbers = #tpu.dot_dimension_numbers<[1], [0], [0], [1], [0, 0, 1, 1], [], []>} : vector<2x64xbf16>, vector<64x256xbf16>, vector<2x256xf32> -> vector<2x256xf32>
    %309 = arith.addf %306, %308 : vector<2x256xf32>
    %310 = vector.extract_strided_slice %309 {offsets = [0, 0], sizes = [2, 192], strides = [1, 1]} : vector<2x256xf32> to vector<2x192xf32>
    %311 = arith.negf %310 : vector<2x192xf32>
    %312 = math.exp %311 : vector<2x192xf32>
    %cst_64 = arith.constant 1.000000e+00 : f32
    %313 = vector.broadcast %cst_64 : f32 to vector<2x192xf32>
    %314 = arith.addf %313, %312 : vector<2x192xf32>
    %315 = arith.divf %313, %314 : vector<2x192xf32>
    %316 = vector.extract_strided_slice %315 {offsets = [0, 0], sizes = [2, 64], strides = [1, 1]} : vector<2x192xf32> to vector<2x64xf32>
    %317 = vector.extract_strided_slice %315 {offsets = [0, 64], sizes = [2, 64], strides = [1, 1]} : vector<2x192xf32> to vector<2x64xf32>
    %318 = vector.extract_strided_slice %315 {offsets = [0, 128], sizes = [2, 64], strides = [1, 1]} : vector<2x192xf32> to vector<2x64xf32>
    %319 = vector.extract_strided_slice %309 {offsets = [0, 192], sizes = [2, 64], strides = [1, 1]} : vector<2x256xf32> to vector<2x64xf32>
    %320 = math.tanh %319 : vector<2x64xf32>
    %321 = arith.mulf %317, %283 : vector<2x64xf32>
    %322 = arith.mulf %316, %320 : vector<2x64xf32>
    %323 = arith.addf %321, %322 : vector<2x64xf32>
    %324 = math.tanh %323 : vector<2x64xf32>
    %325 = arith.mulf %318, %324 : vector<2x64xf32>
    %326 = tpu.concatenate %325, %305 in 1 : vector<2x64xf32>, vector<2x64xf32> -> vector<2x128xf32>
    %327 = arith.truncf %326 : vector<2x128xf32> to vector<2x128xbf16>
    %cst_65 = arith.constant dense<0.000000e+00> : vector<2x256xf32>
    %328 = tpu.matmul %327, %4, %cst_65 {dimension_numbers = #tpu.dot_dimension_numbers<[1], [0], [0], [1], [0, 0, 1, 1], [], []>} : vector<2x128xbf16>, vector<128x256xbf16>, vector<2x256xf32> -> vector<2x256xf32>
    %329 = arith.addf %328, %21 : vector<2x256xf32>
    %330 = vector.extract_strided_slice %329 {offsets = [0, 0], sizes = [2, 192], strides = [1, 1]} : vector<2x256xf32> to vector<2x192xf32>
    %331 = arith.negf %330 : vector<2x192xf32>
    %332 = math.exp %331 : vector<2x192xf32>
    %cst_66 = arith.constant 1.000000e+00 : f32
    %333 = vector.broadcast %cst_66 : f32 to vector<2x192xf32>
    %334 = arith.addf %333, %332 : vector<2x192xf32>
    %335 = arith.divf %333, %334 : vector<2x192xf32>
    %336 = vector.extract_strided_slice %335 {offsets = [0, 0], sizes = [2, 64], strides = [1, 1]} : vector<2x192xf32> to vector<2x64xf32>
    %337 = vector.extract_strided_slice %335 {offsets = [0, 64], sizes = [2, 64], strides = [1, 1]} : vector<2x192xf32> to vector<2x64xf32>
    %338 = vector.extract_strided_slice %335 {offsets = [0, 128], sizes = [2, 64], strides = [1, 1]} : vector<2x192xf32> to vector<2x64xf32>
    %339 = vector.extract_strided_slice %329 {offsets = [0, 192], sizes = [2, 64], strides = [1, 1]} : vector<2x256xf32> to vector<2x64xf32>
    %340 = math.tanh %339 : vector<2x64xf32>
    %341 = arith.mulf %337, %303 : vector<2x64xf32>
    %342 = arith.mulf %336, %340 : vector<2x64xf32>
    %343 = arith.addf %341, %342 : vector<2x64xf32>
    %344 = math.tanh %343 : vector<2x64xf32>
    %345 = arith.mulf %338, %344 : vector<2x64xf32>
    %346 = tpu.concatenate %325, %345 in 0 : vector<2x64xf32>, vector<2x64xf32> -> vector<4x64xf32>
    %347 = arith.truncf %346 : vector<4x64xf32> to vector<4x64xbf16>
    %cst_67 = arith.constant dense<0.000000e+00> : vector<4x64xf32>
    %348 = tpu.matmul %347, %6, %cst_67 {dimension_numbers = #tpu.dot_dimension_numbers<[1], [0], [0], [1], [0, 0, 1, 1], [], []>} : vector<4x64xbf16>, vector<64x64xbf16>, vector<4x64xf32> -> vector<4x64xf32>
    %349 = vector.broadcast %7 : vector<1x64xf32> to vector<4x64xf32>
    %350 = arith.addf %348, %349 : vector<4x64xf32>
    %cst_68 = arith.constant dense<0.000000e+00> : vector<4xf32>
    %351 = vector.multi_reduction <add>, %350, %cst_68 [1] : vector<4x64xf32> to vector<4xf32>
    %352 = vector.shape_cast %351 : vector<4xf32> to vector<4x1xf32>
    %cst_69 = arith.constant 6.400000e+01 : f32
    %353 = vector.broadcast %cst_69 : f32 to vector<4x1xf32>
    %354 = arith.divf %352, %353 : vector<4x1xf32>
    %355 = vector.broadcast %354 : vector<4x1xf32> to vector<4x64xf32>
    %356 = arith.subf %350, %355 : vector<4x64xf32>
    %357 = arith.mulf %356, %356 : vector<4x64xf32>
    %cst_70 = arith.constant dense<0.000000e+00> : vector<4xf32>
    %358 = vector.multi_reduction <add>, %357, %cst_70 [1] : vector<4x64xf32> to vector<4xf32>
    %359 = vector.shape_cast %358 : vector<4xf32> to vector<4x1xf32>
    %cst_71 = arith.constant 6.400000e+01 : f32
    %360 = vector.broadcast %cst_71 : f32 to vector<4x1xf32>
    %361 = arith.divf %359, %360 : vector<4x1xf32>
    %362 = vector.broadcast %354 : vector<4x1xf32> to vector<4x64xf32>
    %363 = arith.subf %350, %362 : vector<4x64xf32>
    %cst_72 = arith.constant 9.99999974E-6 : f32
    %364 = vector.broadcast %cst_72 : f32 to vector<4x1xf32>
    %365 = arith.addf %361, %364 : vector<4x1xf32>
    %366 = math.rsqrt %365 : vector<4x1xf32>
    %367 = vector.broadcast %366 : vector<4x1xf32> to vector<4x64xf32>
    %368 = arith.mulf %363, %367 : vector<4x64xf32>
    %369 = vector.broadcast %8 : vector<1x64xf32> to vector<4x64xf32>
    %370 = arith.mulf %368, %369 : vector<4x64xf32>
    %371 = vector.broadcast %9 : vector<1x64xf32> to vector<4x64xf32>
    %372 = arith.addf %370, %371 : vector<4x64xf32>
    %cst_73 = arith.constant 0.000000e+00 : f32
    %373 = vector.broadcast %cst_73 : f32 to vector<4x64xf32>
    %374 = arith.maximumf %372, %373 : vector<4x64xf32>
    %375 = arith.truncf %374 : vector<4x64xf32> to vector<4x64xbf16>
    %cst_74 = arith.constant dense<0.000000e+00> : vector<4x64xf32>
    %376 = tpu.matmul %375, %10, %cst_74 {dimension_numbers = #tpu.dot_dimension_numbers<[1], [0], [0], [1], [0, 0, 1, 1], [], []>} : vector<4x64xbf16>, vector<64x64xbf16>, vector<4x64xf32> -> vector<4x64xf32>
    %377 = vector.broadcast %11 : vector<1x64xf32> to vector<4x64xf32>
    %378 = arith.addf %376, %377 : vector<4x64xf32>
    %cst_75 = arith.constant dense<0.000000e+00> : vector<4xf32>
    %379 = vector.multi_reduction <add>, %378, %cst_75 [1] : vector<4x64xf32> to vector<4xf32>
    %380 = vector.shape_cast %379 : vector<4xf32> to vector<4x1xf32>
    %cst_76 = arith.constant 6.400000e+01 : f32
    %381 = vector.broadcast %cst_76 : f32 to vector<4x1xf32>
    %382 = arith.divf %380, %381 : vector<4x1xf32>
    %383 = vector.broadcast %382 : vector<4x1xf32> to vector<4x64xf32>
    %384 = arith.subf %378, %383 : vector<4x64xf32>
    %385 = arith.mulf %384, %384 : vector<4x64xf32>
    %cst_77 = arith.constant dense<0.000000e+00> : vector<4xf32>
    %386 = vector.multi_reduction <add>, %385, %cst_77 [1] : vector<4x64xf32> to vector<4xf32>
    %387 = vector.shape_cast %386 : vector<4xf32> to vector<4x1xf32>
    %cst_78 = arith.constant 6.400000e+01 : f32
    %388 = vector.broadcast %cst_78 : f32 to vector<4x1xf32>
    %389 = arith.divf %387, %388 : vector<4x1xf32>
    %390 = vector.broadcast %382 : vector<4x1xf32> to vector<4x64xf32>
    %391 = arith.subf %378, %390 : vector<4x64xf32>
    %cst_79 = arith.constant 9.99999974E-6 : f32
    %392 = vector.broadcast %cst_79 : f32 to vector<4x1xf32>
    %393 = arith.addf %389, %392 : vector<4x1xf32>
    %394 = math.rsqrt %393 : vector<4x1xf32>
    %395 = vector.broadcast %394 : vector<4x1xf32> to vector<4x64xf32>
    %396 = arith.mulf %391, %395 : vector<4x64xf32>
    %397 = vector.broadcast %12 : vector<1x64xf32> to vector<4x64xf32>
    %398 = arith.mulf %396, %397 : vector<4x64xf32>
    %399 = vector.broadcast %13 : vector<1x64xf32> to vector<4x64xf32>
    %400 = arith.addf %398, %399 : vector<4x64xf32>
    %cst_80 = arith.constant 0.000000e+00 : f32
    %401 = vector.broadcast %cst_80 : f32 to vector<4x64xf32>
    %402 = arith.maximumf %400, %401 : vector<4x64xf32>
    %403 = arith.addf %346, %402 : vector<4x64xf32>
    %404 = arith.truncf %403 : vector<4x64xf32> to vector<4x64xbf16>
    %cst_81 = arith.constant dense<0.000000e+00> : vector<4x128xf32>
    %405 = tpu.matmul %404, %14, %cst_81 {dimension_numbers = #tpu.dot_dimension_numbers<[1], [0], [0], [1], [0, 0, 1, 1], [], []>} : vector<4x64xbf16>, vector<64x128xbf16>, vector<4x128xf32> -> vector<4x128xf32>
    %406 = vector.broadcast %15 : vector<1x128xf32> to vector<4x128xf32>
    %407 = arith.addf %405, %406 : vector<4x128xf32>
    %c0_82 = arith.constant 0 : index
    %c0_83 = arith.constant 0 : index
    %408 = vector.load %arg16[%c0_82, %c0_83] : memref<4x128xf32, #tpu.memory_space<vmem>>, vector<4x128xf32>
    tpu.vector_store %arg16[%c0_82, %c0_83], %407 {strides = array<i32>} : memref<4x128xf32, #tpu.memory_space<vmem>>, vector<4x128xf32>,
    return
  }
}

</mosaic_0001>

<bundles_post_ra>
// kernel: lstm_net_forward.1
= control target key start
LH: loop header
LB: loop body
LE: loop exit
PB: predicated region body
PF: predicated region fallthrough
CT: control target
= control target key end

     0   :  { %s3343_s0 = inlined_call_operand.vmem [shape: f32[16,21], index: 0, kind: input, shape index: {}]   ;;  %s3344_s1 = inlined_call_operand.vmem [shape: bf16[21,256], index: 1, kind: input, shape index: {}]   ;;  %s3345_s2 = inlined_call_operand.vmem [shape: bf16[64,256], index: 2, kind: input, shape index: {}]   ;;  %s3346_s3 = inlined_call_operand.vmem [shape: f32[1,256], index: 3, kind: input, shape index: {}]   ;;  %s3347_s4 = inlined_call_operand.vmem [shape: bf16[128,256], index: 4, kind: input, shape index: {}]   ;;  %s3348_s5 = inlined_call_operand.vmem [shape: f32[1,256], index: 5, kind: input, shape index: {}]   ;;  %s3349_s6 = inlined_call_operand.vmem [shape: bf16[64,64], index: 6, kind: input, shape index: {}]   ;;  %s3350_s7 = inlined_call_operand.vmem [shape: f32[1,64], index: 7, kind: input, shape index: {}]   ;;  %s3351_s8 = inlined_call_operand.vmem [shape: f32[1,64], index: 8, kind: input, shape index: {}]   ;;  %s3352_s9 = inlined_call_operand.vmem [shape: f32[1,64], index: 9, kind: input, shape index: {}]   ;;  %s3353_s10 = inlined_call_operand.vmem [shape: bf16[64,64], index: 10, kind: input, shape index: {}]   ;;  %s3354_s11 = inlined_call_operand.vmem [shape: f32[1,64], index: 11, kind: input, shape index: {}]   ;;  %s3355_s12 = inlined_call_operand.vmem [shape: f32[1,64], index: 12, kind: input, shape index: {}]   ;;  %s3356_s13 = inlined_call_operand.vmem [shape: f32[1,64], index: 13, kind: input, shape index: {}]   ;;  %s3357_s14 = inlined_call_operand.vmem [shape: bf16[64,128], index: 14, kind: input, shape index: {}]   ;;  %s3358_s15 = inlined_call_operand.vmem [shape: f32[1,128], index: 15, kind: input, shape index: {}]   ;;  %s3359_s16 = inlined_call_operand.hbm [shape: f32[4,128], index: 16, kind: output, shape index: {}]  }
   0x1   :  { %3361 = sst [smem:[#allocation5_spill]] %s3343_s0 }
   0x2   :  { %v2244_v0 = vld [vmem:[%s3345_s2 + $0x34] sm:$0xf]  ;;  %v2065_v1 = vld [vmem:[%s3345_s2 + $0x38] sm:$0xf0]  ;;  %vm142_vm0 = vcmask 1041408   ;;  %vm143_vm1 = vcmask 1042432  }
   0x3   :  { %v59_v2 = vld [vmem:[%s3344_s1 + $0x10] sm:$0x77]  ;;  %v2609_v3 = vor.u32 %v2244_v0, %v2065_v1  ;;  %v2242_v5 = vld [vmem:[%s3345_s2 + $0x24] sm:$0xf]  ;;  %v2057_v6 = vld [vmem:[%s3345_s2 + $0x28] sm:$0xf0] }
   0x4   :  { %v131_v4 = vunpack.c.h.b16 %v59_v2  ;;  %v130_v7 = vunpack.c.l.b16 %v59_v2  ;;  %v2510_v9 = vmov 65535   ;;  %v2619_v11 = vor.u32 %v2242_v5, %v2057_v6  ;;  %v2236_v12 = vld [vmem:[%s3344_s1 + $0x4] sm:$0xf]  ;;  %v2031_v13 = vld [vmem:[%s3344_s1 + $0x8] sm:$0xf0]  ;;  %s3362_s30 = sld [smem:[#allocation5_spill]] }
   0x5   :  { %246 = vmatpush.bf16.msra.mxu3 %v2609_v3  ;;  %v144_v10 = vsel %vm142_vm0, 4294967295, %v2510_v9  ;;  %v2240_v15 = vld [vmem:[%s3345_s2 + $0x14] sm:$0xf]  ;;  %v2049_v16 = vld [vmem:[%s3345_s2 + $0x18] sm:$0xf0]  ;;  %v2034_v25 = vor.u32 %v2236_v12, %v2031_v13  ;;  %vm138_vm2 = vcmask 171008  }
   0x6   :  { %v135_v8 = vpack.c.b16 %v131_v4, %v131_v4  ;;  %v145_v14 = vsel %vm143_vm1, %v144_v10, 0  ;;  %v2063_v18 = vld [vmem:[%s3345_s2 + $0x30] sm:$0xf]  ;;  %v2245_v19 = vld [vmem:[%s3345_s2 + $0x34] sm:$0xf0]  ;;  %v134_v20 = vpack.c.b16 %v130_v7, %v130_v7  ;;  %v2651_v26 = vor.u32 %v2240_v15, %v2049_v16 }
   0x7   :  { %v2642_v22 = vor.u32 %v2245_v19, %v2063_v18  ;;  %v2055_v23 = vld [vmem:[%s3345_s2 + $0x20] sm:$0xf]  ;;  %v2243_v24 = vld [vmem:[%s3345_s2 + $0x24] sm:$0xf0]  ;;  %v2238_v28 = vld [vmem:[%s3345_s2 + $0x4] sm:$0xf] }
   0x8   :  { %v150_v17 = vand.u32 %v145_v14, %v135_v8  ;;  %v2041_v29 = vld [vmem:[%s3345_s2 + $0x8] sm:$0xf0]  ;;  %v147_v30 = vand.u32 %v145_v14, %v134_v20  ;;  %v2663_v31 = vor.u32 %v2243_v24, %v2055_v23  ;;  %v2047_v32 = vld [vmem:[%s3345_s2 + $0x10] sm:$0xf]  ;;  %v2029_v33 = vld [vmem:[%s3344_s1] sm:$0xf] }
   0x9   :  { %247 = vmatpush.bf16.msra.mxu3 %v2619_v11  ;;  %233 = vmatpush.bf16.msra.mxu2 %v2642_v22  ;;  %v2237_v34 = vld [vmem:[%s3344_s1 + $0x4] sm:$0xf0]  ;;  %v2241_v35 = vld [vmem:[%s3345_s2 + $0x14] sm:$0xf0]  ;;  %v2678_v38 = vor.u32 %v2238_v28, %v2041_v29 }
   0xa   :  { %v55_v21 = vld [vmem:[%s3362_s30] sm:$0xff]  ;;  %172 = vmatpush.bf16.msra.mxu1 %v150_v17  ;;  %v56_v27 = vld [vmem:[%s3362_s30 + $0x8] sm:$0xff]  ;;  %158 = vmatpush.bf16.msra.mxu0 %v147_v30  ;;  %v2030_v36 = vor.u32 %v2237_v34, %v2029_v33 }
   0xb   :  { %v117_v37 = vpack.c.bf16 %v56_v27, %v55_v21 }
   0xd   :  { %248 = vmatpush.bf16.msra.mxu3 %v2651_v26 }
   0xe   :  { %173 = vmatpush.bf16.msra.mxu1 %v2034_v25 }
   0xf   :  { %21 = vsyncpa [#allocation3], 0  ;;  %234 = vmatpush.bf16.msra.mxu2 %v2663_v31  ;;  %v2681_v39 = vor.u32 %v2241_v35, %v2047_v32  ;;  %v2039_v40 = vld [vmem:[%s3345_s2] sm:$0xf]  ;;  %v2239_v41 = vld [vmem:[%s3345_s2 + $0x4] sm:$0xf0]  ;;  %159 = vmatpush.bf16.msra.mxu0 %v2030_v36 }
  0x10   :  { %v2692_v42 = vor.u32 %v2239_v41, %v2039_v40  ;;  %v2511_v43 = vmov 0   ;;  %v2707_v44 = vld [vmem:[%s3346_s3] sm:$0x3]  ;;  %s2512_s23 = smov 64   ;;  %v2129_v10 = vld [vmem:[%s3347_s4 + $0x70] sm:$0xf] }
  0x11   :  { %2036 = vmatmul.msk.bf16.vlgmr.msra.gmra.mxu1 %vm138_vm2, %v117_v37  ;;  %249 = vmatpush.bf16.msra.mxu3 %v2678_v38  ;;  %v120_v45 = vperm.slane %v2707_v44, 1  ;;  %v119_v54 = vperm.slane %v2707_v44, 0  ;;  %v2261_v12 = vld [vmem:[%s3347_s4 + $0x74] sm:$0xf0]  ;;  %v2260_v13 = vld [vmem:[%s3347_s4 + $0x74] sm:$0xf] }
  0x12   :  { %2035 = vmatmul.msk.bf16.vlgmr.msra.gmra.mxu0 %vm138_vm2, %v117_v37  ;;  %v2735_v14 = vor.u32 %v2261_v12, %v2129_v10  ;;  %v2131_v15 = vld [vmem:[%s3347_s4 + $0x78] sm:$0xf0]  ;;  %v2121_v16 = vld [vmem:[%s3347_s4 + $0x60] sm:$0xf]  ;;  %v2259_v17 = vld [vmem:[%s3347_s4 + $0x64] sm:$0xf0] }
  0x13   :  { %235 = vmatpush.bf16.msra.mxu2 %v2681_v39  ;;  %v2746_v18 = vor.u32 %v2260_v13, %v2131_v15  ;;  %v2258_v19 = vld [vmem:[%s3347_s4 + $0x64] sm:$0xf]  ;;  %v2123_v20 = vld [vmem:[%s3347_s4 + $0x68] sm:$0xf0]  ;;  %v2755_v21 = vor.u32 %v2259_v17, %v2121_v16  ;;  %v2113_v24 = vld [vmem:[%s3347_s4 + $0x50] sm:$0xf] }
  0x14   :  { %250 = vmatmul.bf16.vlgmr.msra.gmra.mxu3 %v2511_v43  ;;  %395 = vmatpush.bf16.msrb.mxu0 %v2735_v14  ;;  %v2759_v23 = vor.u32 %v2258_v19, %v2123_v20  ;;  %v2257_v25 = vld [vmem:[%s3347_s4 + $0x54] sm:$0xf0]  ;;  %v2256_v27 = vld [vmem:[%s3347_s4 + $0x54] sm:$0xf]  ;;  %v2115_v28 = vld [vmem:[%s3347_s4 + $0x58] sm:$0xf0] }
  0x15   :  { %498 = vmatpush.bf16.msrb.mxu3 %v2609_v3  ;;  %408 = vmatpush.bf16.msrb.mxu1 %v2746_v18  ;;  %v2775_v29 = vor.u32 %v2257_v25, %v2113_v24  ;;  %v2779_v30 = vor.u32 %v2256_v27, %v2115_v28  ;;  %v2105_v32 = vld [vmem:[%s3347_s4 + $0x40] sm:$0xf]  ;;  %v2255_v33 = vld [vmem:[%s3347_s4 + $0x44] sm:$0xf0]  ;;  %v2254_v34 = vld [vmem:[%s3347_s4 + $0x44] sm:$0xf] }
  0x16   :  { %v2107_v35 = vld [vmem:[%s3347_s4 + $0x48] sm:$0xf0]  ;;  %v2795_v36 = vor.u32 %v2255_v33, %v2105_v32  ;;  %v2097_v40 = vld [vmem:[%s3347_s4 + $0x30] sm:$0xf]  ;;  %v2253_v41 = vld [vmem:[%s3347_s4 + $0x34] sm:$0xf0] }
  0x17   :  { %236 = vmatpush.bf16.msra.mxu2 %v2692_v42  ;;  %v2799_v37 = vor.u32 %v2254_v34, %v2107_v35  ;;  %v2246_v10 = vld [vmem:[%s3347_s4 + $0x4] sm:$0xf]  ;;  %vm225_vm11 = vcmask 523264   ;;  %s2018_s30 = sshll.u32 %s3359_s16, 4  ;;  %s2019_s30 = int_to_ptr.hbm [resolvable:$true] %s2018_s30 }
  0x18   :  { %396 = vmatpush.bf16.msrb.mxu0 %v2755_v21  ;;  %vm2135_vm12 = vmpackc.low %vm225_vm11, %vm225_vm11 }
  0x19   :  { %499 = vmatpush.bf16.msrb.mxu3 %v2619_v11  ;;  %409 = vmatpush.bf16.msrb.mxu1 %v2759_v23 }
  0x1a   :  { %237 = vmatmul.bf16.vlgmr.msra.gmra.mxu2 %v2511_v43  ;;  %v2252_v43 = vld [vmem:[%s3347_s4 + $0x34] sm:$0xf] }
  0x1b   :  { %485 = vmatpush.bf16.msrb.mxu2 %v2642_v22 }
  0x1c   :  { %397 = vmatpush.bf16.msrb.mxu0 %v2775_v29 }
  0x1d   :  { %500 = vmatpush.bf16.msrb.mxu3 %v2651_v26  ;;  %410 = vmatpush.bf16.msrb.mxu1 %v2779_v30 }
  0x1f   :  { %486 = vmatpush.bf16.msrb.mxu2 %v2663_v31 }
  0x20   :  { %398 = vmatpush.bf16.msrb.mxu0 %v2795_v36 }
  0x21   :  { %501 = vmatpush.bf16.msrb.mxu3 %v2678_v38  ;;  %411 = vmatpush.bf16.msrb.mxu1 %v2799_v37 }
  0x23   :  { %487 = vmatpush.bf16.msrb.mxu2 %v2681_v39 }
  0x25   :  { %597 = vmatpush.bf16.msra.mxu3 %v2746_v18 }
  0x27   :  { %488 = vmatpush.bf16.msrb.mxu2 %v2692_v42 }
  0x29   :  { %598 = vmatpush.bf16.msra.mxu3 %v2759_v23 }
  0x2b   :  { %584 = vmatpush.bf16.msra.mxu2 %v2735_v14 }
  0x2d   :  { %599 = vmatpush.bf16.msra.mxu3 %v2779_v30 }
  0x2f   :  { %585 = vmatpush.bf16.msra.mxu2 %v2755_v21 }
  0x31   :  { %600 = vmatpush.bf16.msra.mxu3 %v2799_v37 }
  0x33   :  { %586 = vmatpush.bf16.msra.mxu2 %v2775_v29 }
  0x37   :  { %587 = vmatpush.bf16.msra.mxu2 %v2795_v36 }
  0x8e   :  { %v175_v46 = vpop.f32.mrf.mxu1 }
  0x8f   :  { %v2712_v47 = vadd.f32 %v175_v46, %v120_v45  ;;  %v161_v55 = vpop.f32.mrf.mxu0  ;;  %v2099_v46 = vld [vmem:[%s3347_s4 + $0x38] sm:$0xf0] }
  0x90   :  { %v2722_v56 = vadd.f32 %v161_v55, %v119_v54  ;;  %v2091_v55 = vld [vmem:[%s3347_s4 + $0x28] sm:$0xf0] }
  0x97   :  { %v251_v48 = vpop.f32.mrf.mxu3 }
  0x98   :  { %v2715_v49 = vadd.f32 %v251_v48, %v2712_v47  ;;  %v2815_v48 = vor.u32 %v2253_v41, %v2097_v40  ;;  %v2927_v41 = vpop.f32.mrf.mxu1 }
  0x9a   :  { %2286 = vtanh.f32 %v2715_v49  ;;  %399 = vmatpush.bf16.msrb.mxu0 %v2815_v48  ;;  %588 = vmatpush.bf16.msra.mxu2 %v2815_v48 }
  0x9d   :  { %v238_v50 = vpop.f32.mrf.mxu2 }
  0x9e   :  { %v255_v57 = vadd.f32 %v238_v50, %v2722_v56  ;;  %v2819_v50 = vor.u32 %v2252_v43, %v2099_v46  ;;  %v2929_v43 = vpop.f32.mrf.mxu0  ;;  %v85_v46 = vld [vmem:[%s3348_s5] sm:$0x3] }
  0x9f   :  { %v253_v51 = vpop.f32.mrf.mxu3 }
  0xa0   :  { %v2287_v52 = vpop.eup %2286  ;;  %v2069_v58 = vmul.f32 -1.442695, %v255_v57  ;;  %v2089_v51 = vld [vmem:[%s3347_s4 + $0x20] sm:$0xf]  ;;  %412 = vmatpush.bf16.msrb.mxu1 %v2819_v50  ;;  %601 = vmatpush.bf16.msra.mxu3 %v2819_v50 }
  0xa1   :  { %298 = vrot.lane.b32.xlu0 %v2287_v52, %s2512_s23  ;;  %v2251_v52 = vld [vmem:[%s3347_s4 + $0x24] sm:$0xf0] }
  0xa2   :  { %2288 = vpow2.f32 %v2069_v58  ;;  %v2835_v57 = vor.u32 %v2251_v52, %v2089_v51  ;;  %v2934_v51 = vperm.slane %v85_v46, 1 }
  0xa4   :  { %400 = vmatpush.bf16.msrb.mxu0 %v2835_v57  ;;  %589 = vmatpush.bf16.msra.mxu2 %v2835_v57 }
  0xa5   :  { %v240_v53 = vpop.f32.mrf.mxu2 }
  0xa6   :  { %v2250_v53 = vld [vmem:[%s3347_s4 + $0x24] sm:$0xf] }
  0xa7   :  { %v2839_v58 = vor.u32 %v2250_v53, %v2091_v55 }
  0xa8   :  { %v2289_v59 = vpop.eup %2288 }
  0xa9   :  { %v263_v60 = vadd.f32 1.0, %v2289_v59  ;;  %v2081_v59 = vld [vmem:[%s3347_s4 + $0x10] sm:$0xf]  ;;  %413 = vmatpush.bf16.msrb.mxu1 %v2839_v58  ;;  %602 = vmatpush.bf16.msra.mxu3 %v2839_v58 }
  0xab   :  { %2290 = vrcp.f32 %v263_v60  ;;  %vm270_vm3 = vweird.f32 %v263_v60  ;;  %v276_v1 = vand.u32 2147483648, %v263_v60  ;;  %v274_v4 = vand.u32 2147483647, %v263_v60 }
  0xad   :  { %v277_v5 = vor.u32 1.1754944e-38, %v276_v1  ;;  %vm275_vm6 = vcmp.eq.f32.partialorder %v274_v4, 8.507059e+37 }
  0xb1   :  { %v2291_v61 = vpop.eup %2290 }
  0xb2   :  { %v266_v62 = vmul.f32 %v2291_v61, %v263_v60  ;;  %vm271_vm4 = vweird.f32 %v2291_v61  ;;  %v2249_v60 = vld [vmem:[%s3347_s4 + $0x14] sm:$0xf0] }
  0xb3   :  { %vm272_vm5 = vmor %vm270_vm3, %vm271_vm4 }
  0xb4   :  { %v267_v63 = vsub.f32 1.0, %v266_v62  ;;  %v2248_v62 = vld [vmem:[%s3347_s4 + $0x14] sm:$0xf] }
  0xb6   :  { %v268_v0 = vmul.f32 %v2291_v61, %v267_v63  ;;  %v2083_v63 = vld [vmem:[%s3347_s4 + $0x18] sm:$0xf0] }
  0xb7   :  { %v2861_v4 = vor.u32 %v2248_v62, %v2083_v63 }
  0xb8   :  { %v269_v2 = vadd.f32 %v2291_v61, %v268_v0 }
  0xb9   :  { %414 = vmatpush.bf16.msrb.mxu1 %v2861_v4  ;;  %603 = vmatpush.bf16.msra.mxu3 %v2861_v4 }
  0xba   :  { %v273_v6 = vsel %vm272_vm5, %v2291_v61, %v269_v2  ;;  %v2857_v2 = vor.u32 %v2249_v60, %v2081_v59 }
  0xbb   :  { %v278_v8 = vsel %vm275_vm6, %v277_v5, %v273_v6  ;;  %v2070_v6 = vmul.f32 -1.442695, %v2715_v49  ;;  %v2075_v49 = vld [vmem:[%s3347_s4 + $0x8] sm:$0xf0] }
  0xbc   :  { %v296_v61 = vmul.f32 0.0, %v278_v8  ;;  %401 = vmatpush.bf16.msrb.mxu0 %v2857_v2  ;;  %590 = vmatpush.bf16.msra.mxu2 %v2857_v2  ;;  %v2885_v15 = vor.u32 %v2246_v10, %v2075_v49 }
  0xbe   :  { %415 = vmatpush.bf16.msrb.mxu1 %v2885_v15  ;;  %604 = vmatpush.bf16.msra.mxu3 %v2885_v15 }
  0xc2   :  { %689 = vmatpush.bf16.msra.mxu1 %v2609_v3 }
  0xc6   :  { %690 = vmatpush.bf16.msra.mxu1 %v2619_v11 }
  0xca   :  { %691 = vmatpush.bf16.msra.mxu1 %v2651_v26 }
  0xce   :  { %692 = vmatpush.bf16.msra.mxu1 %v2678_v38 }
 0x113   :  { %v299_v7 = vpop.permute.xlu0 %298 }
 0x114   :  { %v301_v9 = vmul.f32 %v299_v7, %v278_v8  ;;  %v2073_v8 = vld [vmem:[%s3347_s4] sm:$0xf] }
 0x116   :  { %303 = vrot.lane.b32.xlu0 %v301_v9, %s2512_s23  ;;  %v2247_v9 = vld [vmem:[%s3347_s4 + $0x4] sm:$0xf0] }
 0x117   :  { %v2880_v13 = vor.u32 %v2247_v9, %v2073_v8 }
 0x119   :  { %402 = vmatpush.bf16.msrb.mxu0 %v2880_v13  ;;  %591 = vmatpush.bf16.msra.mxu2 %v2880_v13 }
 0x11d   :  { %676 = vmatpush.bf16.msra.mxu0 %v2642_v22 }
 0x121   :  { %677 = vmatpush.bf16.msra.mxu0 %v2663_v31 }
 0x125   :  { %678 = vmatpush.bf16.msra.mxu0 %v2681_v39 }
 0x129   :  { %679 = vmatpush.bf16.msra.mxu0 %v2692_v42 }
 0x188   :  { %v304_v0 = vpop.permute.xlu0 %303 }
 0x189   :  { %v2854_v1 = vadd.f32 %v304_v0, %v296_v61 }
 0x18b   :  { %2292 = vtanh.f32 %v2854_v1 }
 0x18c   :  { %2294 = vpow2.f32 %v2070_v6  ;;  %v2941_v6 = vperm.slane %v85_v46, 0 }
 0x191   :  { %v2293_v5 = vpop.eup %2292 }
 0x192   :  { %309 = vrot.lane.b32.xlu1 %v2293_v5, %s2512_s23  ;;  %v2295_v7 = vpop.eup %2294 }
 0x193   :  { %v264_v12 = vadd.f32 1.0, %v2295_v7 }
 0x195   :  { %2296 = vrcp.f32 %v264_v12  ;;  %v291_v25 = vand.u32 2147483648, %v264_v12  ;;  %vm285_vm8 = vweird.f32 %v264_v12  ;;  %v289_v27 = vand.u32 2147483647, %v264_v12 }
 0x197   :  { %v292_v32 = vor.u32 1.1754944e-38, %v291_v25  ;;  %vm290_vm10 = vcmp.eq.f32.partialorder %v289_v27, 8.507059e+37 }
 0x19b   :  { %v2297_v16 = vpop.eup %2296 }
 0x19c   :  { %v281_v17 = vmul.f32 %v2297_v16, %v264_v12  ;;  %vm286_vm7 = vweird.f32 %v2297_v16 }
 0x19d   :  { %vm287_vm9 = vmor %vm285_vm8, %vm286_vm7 }
 0x19e   :  { %v282_v19 = vsub.f32 1.0, %v281_v17 }
 0x1a0   :  { %v283_v20 = vmul.f32 %v2297_v16, %v282_v19 }
 0x1a2   :  { %v284_v24 = vadd.f32 %v2297_v16, %v283_v20 }
 0x1a4   :  { %v288_v28 = vsel %vm287_vm9, %v2297_v16, %v284_v24 }
 0x1a5   :  { %v293_v33 = vsel %vm290_vm10, %v292_v32, %v288_v28 }
 0x204   :  { %v310_v34 = vpop.permute.xlu1 %309 }
 0x205   :  { %v312_v35 = vmul.f32 %v310_v34, %v293_v33 }
 0x207   :  { %v2136_v40 = vpack.c.bf16 %v312_v35, %v312_v35 }
 0x209   :  { %2137 = vmatmul.msk.bf16.vlgmr.msrb.gmra.mxu0 %vm2135_vm12, %v2136_v40  ;;  %2140 = vmatmul.msk.bf16.vlgmr.msrb.gmra.mxu1 %vm2135_vm12, %v2136_v40 }
 0x20a   :  { %2143 = vmatmul.msk.bf16.vlgmr.msrb.gmra.mxu2 %vm225_vm11, %v2136_v40  ;;  %2144 = vmatmul.msk.bf16.vlgmr.msrb.gmra.mxu3 %vm225_vm11, %v2136_v40 }
 0x20b   :  { %867 = vmatpush.bf16.msrb.mxu2 %v2642_v22  ;;  %880 = vmatpush.bf16.msrb.mxu3 %v2609_v3 }
 0x20c   :  { %775 = vmatpush.bf16.msrb.mxu0 %v2735_v14  ;;  %788 = vmatpush.bf16.msrb.mxu1 %v2746_v18 }
 0x20f   :  { %868 = vmatpush.bf16.msrb.mxu2 %v2663_v31  ;;  %881 = vmatpush.bf16.msrb.mxu3 %v2619_v11 }
 0x210   :  { %776 = vmatpush.bf16.msrb.mxu0 %v2755_v21  ;;  %789 = vmatpush.bf16.msrb.mxu1 %v2759_v23 }
 0x213   :  { %869 = vmatpush.bf16.msrb.mxu2 %v2681_v39  ;;  %882 = vmatpush.bf16.msrb.mxu3 %v2651_v26 }
 0x214   :  { %777 = vmatpush.bf16.msrb.mxu0 %v2775_v29  ;;  %790 = vmatpush.bf16.msrb.mxu1 %v2779_v30 }
 0x217   :  { %870 = vmatpush.bf16.msrb.mxu2 %v2692_v42  ;;  %883 = vmatpush.bf16.msrb.mxu3 %v2678_v38 }
 0x218   :  { %778 = vmatpush.bf16.msrb.mxu0 %v2795_v36  ;;  %791 = vmatpush.bf16.msrb.mxu1 %v2799_v37 }
 0x21c   :  { %779 = vmatpush.bf16.msrb.mxu0 %v2815_v48  ;;  %792 = vmatpush.bf16.msrb.mxu1 %v2819_v50 }
 0x220   :  { %780 = vmatpush.bf16.msrb.mxu0 %v2835_v57  ;;  %793 = vmatpush.bf16.msrb.mxu1 %v2839_v58 }
 0x224   :  { %781 = vmatpush.bf16.msrb.mxu0 %v2857_v2  ;;  %794 = vmatpush.bf16.msrb.mxu1 %v2861_v4 }
 0x228   :  { %782 = vmatpush.bf16.msrb.mxu0 %v2880_v13  ;;  %795 = vmatpush.bf16.msrb.mxu1 %v2885_v15 }
 0x286   :  { %v404_v52 = vpop.f32.mrf.mxu0  ;;  %v417_v53 = vpop.f32.mrf.mxu1 }
 0x287   :  { %v2937_v55 = vadd.f32 %v417_v53, %v2934_v51  ;;  %v405_v7 = vadd.f32 %v404_v52, %v2941_v6 }
 0x289   :  { %2298 = vtanh.f32 %v2937_v55  ;;  %v2141_v8 = vmul.f32 -1.442695, %v405_v7 }
 0x28b   :  { %2300 = vpow2.f32 %v2141_v8 }
 0x28d   :  { %v490_v59 = vpop.f32.mrf.mxu2  ;;  %v503_v60 = vpop.f32.mrf.mxu3 }
 0x28e   :  { %v406_v61 = vpop.f32.mrf.mxu0  ;;  %v419_v62 = vpop.f32.mrf.mxu1  ;;  %v510_v25 = vrot.slane %v503_v60, 6  ;;  %v509_v46 = vrot.slane %v490_v59, 6 }
 0x28f   :  { %v2299_v63 = vpop.eup %2298 }
 0x290   :  { %462 = vrot.lane.b32.xlu1 %v2299_v63, %s2512_s23  ;;  %v2945_v32 = vadd.f32 %v510_v25, %v2712_v47  ;;  %v513_v52 = vadd.f32 %v509_v46, %v2722_v56  ;;  %v2142_v25 = vmul.f32 -1.442695, %v2937_v55 }
 0x291   :  { %v2301_v9 = vpop.eup %2300 }
 0x292   :  { %v427_v10 = vadd.f32 1.0, %v2301_v9  ;;  %v2145_v53 = vmul.f32 -1.442695, %v513_v52 }
 0x294   :  { %2302 = vrcp.f32 %v427_v10  ;;  %v440_v20 = vand.u32 2147483648, %v427_v10  ;;  %vm434_vm14 = vweird.f32 %v427_v10  ;;  %v438_v24 = vand.u32 2147483647, %v427_v10 }
 0x295   :  { %v492_v0 = vpop.f32.mrf.mxu2  ;;  %v505_v5 = vpop.f32.mrf.mxu3  ;;  %2304 = vtanh.f32 %v2945_v32 }
 0x296   :  { %v441_v28 = vor.u32 1.1754944e-38, %v440_v20  ;;  %vm439_vm1 = vcmp.eq.f32.partialorder %v438_v24, 8.507059e+37  ;;  %2306 = vpow2.f32 %v2145_v53 }
 0x29a   :  { %v2303_v12 = vpop.eup %2302 }
 0x29b   :  { %v430_v49 = vmul.f32 %v2303_v12, %v427_v10  ;;  %vm435_vm13 = vweird.f32 %v2303_v12  ;;  %v2305_v40 = vpop.eup %2304 }
 0x29c   :  { %vm436_vm15 = vmor %vm434_vm14, %vm435_vm13  ;;  %v2307_v60 = vpop.eup %2306 }
 0x29d   :  { %v431_v16 = vsub.f32 1.0, %v430_v49  ;;  %v521_v61 = vadd.f32 1.0, %v2307_v60 }
 0x29f   :  { %v432_v17 = vmul.f32 %v2303_v12, %v431_v16  ;;  %2308 = vrcp.f32 %v521_v61  ;;  %vm528_vm3 = vweird.f32 %v521_v61  ;;  %v532_v59 = vand.u32 2147483647, %v521_v61 }
 0x2a1   :  { %v433_v19 = vadd.f32 %v2303_v12, %v432_v17  ;;  %vm533_vm5 = vcmp.eq.f32.partialorder %v532_v59, 8.507059e+37  ;;  %v2146_v59 = vmul.f32 -1.442695, %v2945_v32 }
 0x2a3   :  { %v437_v27 = vsel %vm436_vm15, %v2303_v12, %v433_v19  ;;  %v534_v12 = vand.u32 2147483648, %v521_v61 }
 0x2a4   :  { %v442_v34 = vsel %vm439_vm1, %v441_v28, %v437_v27 }
 0x2a5   :  { %v2309_v62 = vpop.eup %2308  ;;  %v460_v7 = vmul.f32 0.0, %v442_v34  ;;  %v535_v16 = vor.u32 1.1754944e-38, %v534_v12 }
 0x2a6   :  { %v524_v63 = vmul.f32 %v2309_v62, %v521_v61  ;;  %vm529_vm2 = vweird.f32 %v2309_v62  ;;  %v555_v61 = vrot.slane %v2854_v1, 6 }
 0x2a7   :  { %vm530_vm4 = vmor %vm528_vm3, %vm529_vm2 }
 0x2a8   :  { %v525_v0 = vsub.f32 1.0, %v524_v63 }
 0x2aa   :  { %v526_v5 = vmul.f32 %v2309_v62, %v525_v0 }
 0x2ac   :  { %v527_v10 = vadd.f32 %v2309_v62, %v526_v5 }
 0x2ae   :  { %v531_v49 = vsel %vm530_vm4, %v2309_v62, %v527_v10 }
 0x2af   :  { %v536_v17 = vsel %vm533_vm5, %v535_v16, %v531_v49 }
 0x2b0   :  { %v557_v0 = vmul.f32 %v555_v61, %v536_v17 }
 0x302   :  { %v463_v33 = vpop.permute.xlu1 %462 }
 0x303   :  { %v465_v35 = vmul.f32 %v463_v33, %v442_v34 }
 0x305   :  { %467 = vrot.lane.b32.xlu2 %v465_v35, %s2512_s23 }
 0x30d   :  { %559 = vrot.lane.b32.xlu2 %v2305_v40, %s2512_s23 }
 0x35f   :  { %v468_v8 = vpop.permute.xlu2 %467 }
 0x360   :  { %v2951_v9 = vadd.f32 %v468_v8, %v460_v7 }
 0x362   :  { %2310 = vtanh.f32 %v2951_v9 }
 0x363   :  { %2312 = vpow2.f32 %v2142_v25 }
 0x367   :  { %v560_v19 = vpop.permute.xlu2 %559 }
 0x368   :  { %v2311_v20 = vpop.eup %2310  ;;  %v562_v24 = vmul.f32 %v560_v19, %v536_v17 }
 0x369   :  { %473 = vrot.lane.b32.xlu1 %v2311_v20, %s2512_s23  ;;  %v2313_v27 = vpop.eup %2312 }
 0x36a   :  { %564 = vrot.lane.b32.xlu0 %v562_v24, %s2512_s23  ;;  %v428_v28 = vadd.f32 1.0, %v2313_v27 }
 0x36c   :  { %2314 = vrcp.f32 %v428_v28  ;;  %v455_v52 = vand.u32 2147483648, %v428_v28  ;;  %vm449_vm7 = vweird.f32 %v428_v28  ;;  %v453_v53 = vand.u32 2147483647, %v428_v28 }
 0x36e   :  { %v456_v62 = vor.u32 1.1754944e-38, %v455_v52  ;;  %vm454_vm9 = vcmp.eq.f32.partialorder %v453_v53, 8.507059e+37 }
 0x372   :  { %v2315_v33 = vpop.eup %2314 }
 0x373   :  { %v445_v34 = vmul.f32 %v2315_v33, %v428_v28  ;;  %vm450_vm6 = vweird.f32 %v2315_v33 }
 0x374   :  { %vm451_vm8 = vmor %vm449_vm7, %vm450_vm6 }
 0x375   :  { %v446_v35 = vsub.f32 1.0, %v445_v34 }
 0x377   :  { %v447_v40 = vmul.f32 %v2315_v33, %v446_v35 }
 0x379   :  { %v448_v46 = vadd.f32 %v2315_v33, %v447_v40 }
 0x37b   :  { %v452_v60 = vsel %vm451_vm8, %v2315_v33, %v448_v46 }
 0x37c   :  { %v457_v55 = vsel %vm454_vm9, %v456_v62, %v452_v60 }
 0x3db   :  { %v474_v63 = vpop.permute.xlu1 %473 }
 0x3dc   :  { %v476_v5 = vmul.f32 %v474_v63, %v457_v55  ;;  %v565_v7 = vpop.permute.xlu0 %564 }
 0x3dd   :  { %v2958_v8 = vadd.f32 %v565_v7, %v557_v0 }
 0x3de   :  { %v575_v10 = vrot.slane %v476_v5, 6 }
 0x3df   :  { %2316 = vtanh.f32 %v2958_v8 }
 0x3e0   :  { %576 = vrot.lane.b32.xlu0 %v575_v10, %s2512_s23  ;;  %2318 = vpow2.f32 %v2146_v59 }
 0x3e5   :  { %v2317_v12 = vpop.eup %2316 }
 0x3e6   :  { %570 = vrot.lane.b32.xlu2 %v2317_v12, %s2512_s23  ;;  %v2319_v1 = vpop.eup %2318 }
 0x3e7   :  { %v522_v49 = vadd.f32 1.0, %v2319_v1 }
 0x3e9   :  { %2320 = vrcp.f32 %v522_v49  ;;  %v549_v25 = vand.u32 2147483648, %v522_v49  ;;  %vm543_vm12 = vweird.f32 %v522_v49  ;;  %v547_v27 = vand.u32 2147483647, %v522_v49 }
 0x3eb   :  { %v550_v33 = vor.u32 1.1754944e-38, %v549_v25  ;;  %vm548_vm14 = vcmp.eq.f32.partialorder %v547_v27, 8.507059e+37 }
 0x3ef   :  { %v2321_v16 = vpop.eup %2320 }
 0x3f0   :  { %v539_v17 = vmul.f32 %v2321_v16, %v522_v49  ;;  %vm544_vm10 = vweird.f32 %v2321_v16 }
 0x3f1   :  { %vm545_vm13 = vmor %vm543_vm12, %vm544_vm10 }
 0x3f2   :  { %v540_v19 = vsub.f32 1.0, %v539_v17 }
 0x3f4   :  { %v541_v20 = vmul.f32 %v2321_v16, %v540_v19 }
 0x3f6   :  { %v542_v24 = vadd.f32 %v2321_v16, %v541_v20 }
 0x3f8   :  { %v546_v28 = vsel %vm545_vm13, %v2321_v16, %v542_v24 }
 0x3f9   :  { %v551_v34 = vsel %vm548_vm14, %v550_v33, %v546_v28 }
 0x440   :  { %v571_v35 = vpop.permute.xlu2 %570 }
 0x441   :  { %v573_v32 = vmul.f32 %v571_v35, %v551_v34 }
 0x443   :  { %v666_v40 = vpack.c.bf16 %v573_v32, %v573_v32 }
 0x445   :  { %v668_v46 = vrot.slane %v666_v40, 1 }
 0x447   :  { %2149 = vmatmul.msk.bf16.vlgmr.msra.gmra.mxu0 %vm225_vm11, %v668_v46  ;;  %2150 = vmatmul.msk.bf16.vlgmr.msra.gmra.mxu1 %vm225_vm11, %v668_v46 }
 0x448   :  { %1058 = vmatpush.bf16.msra.mxu0 %v2642_v22  ;;  %1071 = vmatpush.bf16.msra.mxu1 %v2609_v3 }
 0x44c   :  { %1059 = vmatpush.bf16.msra.mxu0 %v2663_v31  ;;  %1072 = vmatpush.bf16.msra.mxu1 %v2619_v11 }
 0x450   :  { %1060 = vmatpush.bf16.msra.mxu0 %v2681_v39  ;;  %1073 = vmatpush.bf16.msra.mxu1 %v2651_v26 }
 0x452   :  { %v577_v52 = vpop.permute.xlu0 %576 }
 0x453   :  { %v579_v53 = vsel %vm225_vm11, %v573_v32, %v577_v52 }
 0x454   :  { %v580_v60 = vpack.c.bf16 %v579_v53, %v579_v53  ;;  %1061 = vmatpush.bf16.msra.mxu0 %v2692_v42  ;;  %1074 = vmatpush.bf16.msra.mxu1 %v2678_v38 }
 0x456   :  { %v582_v61 = vrot.slane %v580_v60, 1 }
 0x458   :  { %592 = vmatmul.bf16.vlgmr.msra.gmra.mxu2 %v582_v61  ;;  %605 = vmatmul.bf16.vlgmr.msra.gmra.mxu3 %v582_v61 }
 0x459   :  { %966 = vmatpush.bf16.msra.mxu2 %v2735_v14  ;;  %979 = vmatpush.bf16.msra.mxu3 %v2746_v18 }
 0x45d   :  { %967 = vmatpush.bf16.msra.mxu2 %v2755_v21  ;;  %980 = vmatpush.bf16.msra.mxu3 %v2759_v23 }
 0x461   :  { %968 = vmatpush.bf16.msra.mxu2 %v2775_v29  ;;  %981 = vmatpush.bf16.msra.mxu3 %v2779_v30 }
 0x465   :  { %969 = vmatpush.bf16.msra.mxu2 %v2795_v36  ;;  %982 = vmatpush.bf16.msra.mxu3 %v2799_v37 }
 0x469   :  { %970 = vmatpush.bf16.msra.mxu2 %v2815_v48  ;;  %983 = vmatpush.bf16.msra.mxu3 %v2819_v50 }
 0x46d   :  { %971 = vmatpush.bf16.msra.mxu2 %v2835_v57  ;;  %984 = vmatpush.bf16.msra.mxu3 %v2839_v58 }
 0x471   :  { %972 = vmatpush.bf16.msra.mxu2 %v2857_v2  ;;  %985 = vmatpush.bf16.msra.mxu3 %v2861_v4 }
 0x475   :  { %973 = vmatpush.bf16.msra.mxu2 %v2880_v13  ;;  %986 = vmatpush.bf16.msra.mxu3 %v2885_v15 }
 0x4c4   :  { %v681_v62 = vpop.f32.mrf.mxu0  ;;  %v694_v55 = vpop.f32.mrf.mxu1 }
 0x4c5   :  { %v701_v63 = vrot.slane %v694_v55, 4  ;;  %v700_v19 = vrot.slane %v681_v62, 4 }
 0x4c7   :  { %v2992_v0 = vadd.f32 %v701_v63, %v2712_v47  ;;  %v704_v20 = vadd.f32 %v700_v19, %v2722_v56 }
 0x4c9   :  { %2322 = vtanh.f32 %v2992_v0  ;;  %v2151_v24 = vmul.f32 -1.442695, %v704_v20 }
 0x4cc   :  { %v683_v5 = vpop.f32.mrf.mxu0  ;;  %v696_v7 = vpop.f32.mrf.mxu1 }
 0x4cf   :  { %v2323_v10 = vpop.eup %2322 }
 0x4d0   :  { %750 = vrot.lane.b32.xlu0 %v2323_v10, %s2512_s23 }
 0x4db   :  { %v593_v12 = vpop.f32.mrf.mxu2  ;;  %v606_v59 = vpop.f32.mrf.mxu3 }
 0x4dc   :  { %v2997_v1 = vadd.f32 %v606_v59, %v2934_v51  ;;  %v594_v28 = vadd.f32 %v593_v12, %v2941_v6 }
 0x4de   :  { %2324 = vtanh.f32 %v2997_v1  ;;  %v2147_v33 = vmul.f32 -1.442695, %v594_v28 }
 0x4df   :  { %2326 = vpow2.f32 %v2151_v24 }
 0x4e3   :  { %v595_v49 = vpop.f32.mrf.mxu2  ;;  %v608_v16 = vpop.f32.mrf.mxu3 }
 0x4e4   :  { %v2325_v17 = vpop.eup %2324 }
 0x4e5   :  { %651 = vrot.lane.b32.xlu1 %v2325_v17, %s2512_s23  ;;  %v2327_v25 = vpop.eup %2326 }
 0x4e6   :  { %v712_v27 = vadd.f32 1.0, %v2327_v25 }
 0x4e8   :  { %2328 = vrcp.f32 %v712_v27  ;;  %v725_v60 = vand.u32 2147483648, %v712_v27  ;;  %vm719_vm1 = vweird.f32 %v712_v27  ;;  %v723_v61 = vand.u32 2147483647, %v712_v27 }
 0x4e9   :  { %2330 = vpow2.f32 %v2147_v33 }
 0x4ea   :  { %v726_v55 = vor.u32 1.1754944e-38, %v725_v60  ;;  %vm724_vm3 = vcmp.eq.f32.partialorder %v723_v61, 8.507059e+37 }
 0x4ee   :  { %v2329_v34 = vpop.eup %2328 }
 0x4ef   :  { %v715_v35 = vmul.f32 %v2329_v34, %v712_v27  ;;  %v2331_v40 = vpop.eup %2330  ;;  %vm720_vm15 = vweird.f32 %v2329_v34 }
 0x4f0   :  { %v616_v46 = vadd.f32 1.0, %v2331_v40  ;;  %vm721_vm2 = vmor %vm719_vm1, %vm720_vm15 }
 0x4f1   :  { %v716_v32 = vsub.f32 1.0, %v715_v35 }
 0x4f2   :  { %2332 = vrcp.f32 %v616_v46  ;;  %v629_v17 = vand.u32 2147483648, %v616_v46  ;;  %vm623_vm5 = vweird.f32 %v616_v46  ;;  %v627_v19 = vand.u32 2147483647, %v616_v46 }
 0x4f3   :  { %v717_v52 = vmul.f32 %v2329_v34, %v716_v32 }
 0x4f4   :  { %v630_v24 = vor.u32 1.1754944e-38, %v629_v17  ;;  %vm628_vm7 = vcmp.eq.f32.partialorder %v627_v19, 8.507059e+37 }
 0x4f5   :  { %v718_v53 = vadd.f32 %v2329_v34, %v717_v52 }
 0x4f7   :  { %v722_v62 = vsel %vm721_vm2, %v2329_v34, %v718_v53  ;;  %v746_v34 = vrot.slane %v2958_v8, 6 }
 0x4f8   :  { %v2333_v63 = vpop.eup %2332  ;;  %v727_v5 = vsel %vm724_vm3, %v726_v55, %v722_v62 }
 0x4f9   :  { %v619_v12 = vmul.f32 %v2333_v63, %v616_v46  ;;  %vm624_vm4 = vweird.f32 %v2333_v63  ;;  %v748_v40 = vmul.f32 %v746_v34, %v727_v5 }
 0x4fa   :  { %vm625_vm6 = vmor %vm623_vm5, %vm624_vm4 }
 0x4fb   :  { %v620_v59 = vsub.f32 1.0, %v619_v12 }
 0x4fd   :  { %v621_v49 = vmul.f32 %v2333_v63, %v620_v59 }
 0x4ff   :  { %v622_v16 = vadd.f32 %v2333_v63, %v621_v49 }
 0x501   :  { %v626_v20 = vsel %vm625_vm6, %v2333_v63, %v622_v16  ;;  %v2152_v63 = vmul.f32 -1.442695, %v2992_v0 }
 0x502   :  { %v631_v27 = vsel %vm628_vm7, %v630_v24, %v626_v20 }
 0x503   :  { %v649_v33 = vmul.f32 %v631_v27, %v2951_v9  ;;  %v2148_v9 = vmul.f32 -1.442695, %v2997_v1 }
 0x542   :  { %v751_v7 = vpop.permute.xlu0 %750 }
 0x543   :  { %v753_v10 = vmul.f32 %v751_v7, %v727_v5 }
 0x545   :  { %755 = vrot.lane.b32.xlu1 %v753_v10, %s2512_s23 }
 0x557   :  { %v652_v25 = vpop.permute.xlu1 %651 }
 0x558   :  { %v654_v28 = vmul.f32 %v652_v25, %v631_v27 }
 0x55a   :  { %656 = vrot.lane.b32.xlu2 %v654_v28, %s2512_s23 }
 0x5b4   :  { %v657_v35 = vpop.permute.xlu2 %656 }
 0x5b5   :  { %v3007_v32 = vadd.f32 %v657_v35, %v649_v33 }
 0x5b7   :  { %2334 = vtanh.f32 %v3007_v32  ;;  %v756_v46 = vpop.permute.xlu1 %755 }
 0x5b8   :  { %v3010_v52 = vadd.f32 %v756_v46, %v748_v40 }
 0x5ba   :  { %2336 = vtanh.f32 %v3010_v52 }
 0x5bb   :  { %2338 = vpow2.f32 %v2148_v9 }
 0x5bd   :  { %v2335_v53 = vpop.eup %2334 }
 0x5be   :  { %662 = vrot.lane.b32.xlu2 %v2335_v53, %s2512_s23 }
 0x5c0   :  { %v2337_v60 = vpop.eup %2336 }
 0x5c1   :  { %761 = vrot.lane.b32.xlu0 %v2337_v60, %s2512_s23  ;;  %v2339_v8 = vpop.eup %2338 }
 0x5c2   :  { %v617_v61 = vadd.f32 1.0, %v2339_v8 }
 0x5c4   :  { %2340 = vrcp.f32 %v617_v61  ;;  %v644_v59 = vand.u32 2147483648, %v617_v61  ;;  %vm638_vm9 = vweird.f32 %v617_v61  ;;  %v642_v16 = vand.u32 2147483647, %v617_v61 }
 0x5c5   :  { %2342 = vpow2.f32 %v2152_v63 }
 0x5c6   :  { %v645_v17 = vor.u32 1.1754944e-38, %v644_v59  ;;  %vm643_vm12 = vcmp.eq.f32.partialorder %v642_v16, 8.507059e+37 }
 0x5ca   :  { %v2341_v62 = vpop.eup %2340 }
 0x5cb   :  { %v634_v55 = vmul.f32 %v2341_v62, %v617_v61  ;;  %v2343_v10 = vpop.eup %2342  ;;  %vm639_vm8 = vweird.f32 %v2341_v62 }
 0x5cc   :  { %v713_v49 = vadd.f32 1.0, %v2343_v10  ;;  %vm640_vm10 = vmor %vm638_vm9, %vm639_vm8 }
 0x5cd   :  { %v635_v5 = vsub.f32 1.0, %v634_v55 }
 0x5ce   :  { %2344 = vrcp.f32 %v713_v49  ;;  %v740_v35 = vand.u32 2147483648, %v713_v49  ;;  %vm734_vm14 = vweird.f32 %v713_v49  ;;  %v738_v40 = vand.u32 2147483647, %v713_v49 }
 0x5cf   :  { %v636_v7 = vmul.f32 %v2341_v62, %v635_v5 }
 0x5d0   :  { %v741_v53 = vor.u32 1.1754944e-38, %v740_v35  ;;  %vm739_vm1 = vcmp.eq.f32.partialorder %v738_v40, 8.507059e+37 }
 0x5d1   :  { %v637_v12 = vadd.f32 %v2341_v62, %v636_v7 }
 0x5d3   :  { %v641_v1 = vsel %vm640_vm10, %v2341_v62, %v637_v12 }
 0x5d4   :  { %v646_v19 = vsel %vm643_vm12, %v645_v17, %v641_v1  ;;  %v2345_v0 = vpop.eup %2344 }
 0x5d5   :  { %v730_v27 = vmul.f32 %v2345_v0, %v713_v49  ;;  %vm735_vm13 = vweird.f32 %v2345_v0 }
 0x5d6   :  { %vm736_vm15 = vmor %vm734_vm14, %vm735_vm13 }
 0x5d7   :  { %v731_v28 = vsub.f32 1.0, %v730_v27 }
 0x5d9   :  { %v732_v33 = vmul.f32 %v2345_v0, %v731_v28 }
 0x5db   :  { %v733_v34 = vadd.f32 %v2345_v0, %v732_v33 }
 0x5dd   :  { %v737_v46 = vsel %vm736_vm15, %v2345_v0, %v733_v34 }
 0x5de   :  { %v742_v60 = vsel %vm739_vm1, %v741_v53, %v737_v46 }
 0x618   :  { %v663_v20 = vpop.permute.xlu2 %662 }
 0x619   :  { %v665_v24 = vmul.f32 %v663_v20, %v646_v19 }
 0x61b   :  { %v766_v25 = vrot.slane %v665_v24, 4 }
 0x61d   :  { %767 = vrot.lane.b32.xlu1 %v766_v25, %s2512_s23 }
 0x633   :  { %v762_v9 = vpop.permute.xlu0 %761 }
 0x634   :  { %v764_v8 = vmul.f32 %v762_v9, %v742_v60 }
 0x636   :  { %v857_v61 = vpack.c.bf16 %v764_v8, %v764_v8 }
 0x638   :  { %v859_v62 = vrot.slane %v857_v61, 2 }
 0x63a   :  { %2155 = vmatmul.msk.bf16.vlgmr.msrb.gmra.mxu2 %vm225_vm11, %v859_v62  ;;  %2156 = vmatmul.msk.bf16.vlgmr.msrb.gmra.mxu3 %vm225_vm11, %v859_v62 }
 0x63b   :  { %1237 = vmatpush.bf16.msrb.mxu2 %v2642_v22  ;;  %1250 = vmatpush.bf16.msrb.mxu3 %v2609_v3 }
 0x63f   :  { %1238 = vmatpush.bf16.msrb.mxu2 %v2663_v31  ;;  %1251 = vmatpush.bf16.msrb.mxu3 %v2619_v11 }
 0x643   :  { %1239 = vmatpush.bf16.msrb.mxu2 %v2681_v39  ;;  %1252 = vmatpush.bf16.msrb.mxu3 %v2651_v26 }
 0x647   :  { %1240 = vmatpush.bf16.msrb.mxu2 %v2692_v42  ;;  %1253 = vmatpush.bf16.msrb.mxu3 %v2678_v38 }
 0x68f   :  { %v768_v55 = vpop.permute.xlu1 %767 }
 0x690   :  { %v770_v63 = vsel %vm225_vm11, %v764_v8, %v768_v55 }
 0x691   :  { %v771_v5 = vpack.c.bf16 %v770_v63, %v770_v63 }
 0x693   :  { %v773_v7 = vrot.slane %v771_v5, 2 }
 0x695   :  { %783 = vmatmul.bf16.vlgmr.msrb.gmra.mxu0 %v773_v7  ;;  %796 = vmatmul.bf16.vlgmr.msrb.gmra.mxu1 %v773_v7 }
 0x696   :  { %1147 = vmatpush.bf16.msrb.mxu0 %v2735_v14  ;;  %1160 = vmatpush.bf16.msrb.mxu1 %v2746_v18 }
 0x69a   :  { %1148 = vmatpush.bf16.msrb.mxu0 %v2755_v21  ;;  %1161 = vmatpush.bf16.msrb.mxu1 %v2759_v23 }
 0x69e   :  { %1149 = vmatpush.bf16.msrb.mxu0 %v2775_v29  ;;  %1162 = vmatpush.bf16.msrb.mxu1 %v2779_v30 }
 0x6a2   :  { %1150 = vmatpush.bf16.msrb.mxu0 %v2795_v36  ;;  %1163 = vmatpush.bf16.msrb.mxu1 %v2799_v37 }
 0x6a6   :  { %1151 = vmatpush.bf16.msrb.mxu0 %v2815_v48  ;;  %1164 = vmatpush.bf16.msrb.mxu1 %v2819_v50 }
 0x6aa   :  { %1152 = vmatpush.bf16.msrb.mxu0 %v2835_v57  ;;  %1165 = vmatpush.bf16.msrb.mxu1 %v2839_v58 }
 0x6ae   :  { %1153 = vmatpush.bf16.msrb.mxu0 %v2857_v2  ;;  %1166 = vmatpush.bf16.msrb.mxu1 %v2861_v4 }
 0x6b2   :  { %1154 = vmatpush.bf16.msrb.mxu0 %v2880_v13  ;;  %1167 = vmatpush.bf16.msrb.mxu1 %v2885_v15 }
 0x6bd   :  { %v872_v10 = vpop.f32.mrf.mxu2  ;;  %v885_v12 = vpop.f32.mrf.mxu3 }
 0x6be   :  { %v892_v59 = vrot.slane %v885_v12, 2  ;;  %v891_v19 = vrot.slane %v872_v10, 2 }
 0x6c0   :  { %v3046_v49 = vadd.f32 %v892_v59, %v2712_v47  ;;  %v895_v20 = vadd.f32 %v891_v19, %v2722_v56 }
 0x6c2   :  { %2346 = vtanh.f32 %v3046_v49  ;;  %v2157_v24 = vmul.f32 -1.442695, %v895_v20 }
 0x6c4   :  { %2348 = vpow2.f32 %v2157_v24 }
 0x6c5   :  { %v874_v16 = vpop.f32.mrf.mxu2  ;;  %v887_v1 = vpop.f32.mrf.mxu3 }
 0x6c8   :  { %v2347_v17 = vpop.eup %2346 }
 0x6c9   :  { %941 = vrot.lane.b32.xlu1 %v2347_v17, %s2512_s23 }
 0x6ca   :  { %v2349_v47 = vpop.eup %2348 }
 0x6cb   :  { %v903_v35 = vadd.f32 1.0, %v2349_v47 }
 0x6cd   :  { %v916_v9 = vand.u32 2147483648, %v903_v35  ;;  %vm910_vm3 = vweird.f32 %v903_v35  ;;  %v914_v8 = vand.u32 2147483647, %v903_v35 }
 0x6cf   :  { %v917_v62 = vor.u32 1.1754944e-38, %v916_v9  ;;  %vm915_vm5 = vcmp.eq.f32.partialorder %v914_v8, 8.507059e+37 }
 0x712   :  { %v784_v25 = vpop.f32.mrf.mxu0  ;;  %v797_v0 = vpop.f32.mrf.mxu1 }
 0x713   :  { %v3052_v27 = vadd.f32 %v797_v0, %v2934_v51  ;;  %v785_v7 = vadd.f32 %v784_v25, %v2941_v6 }
 0x715   :  { %2350 = vtanh.f32 %v3052_v27  ;;  %v2153_v10 = vmul.f32 -1.442695, %v785_v7 }
 0x716   :  { %2352 = vrcp.f32 %v903_v35 }
 0x717   :  { %2354 = vpow2.f32 %v2153_v10 }
 0x71a   :  { %v786_v28 = vpop.f32.mrf.mxu0  ;;  %v799_v33 = vpop.f32.mrf.mxu1 }
 0x71b   :  { %v2351_v34 = vpop.eup %2350 }
 0x71c   :  { %842 = vrot.lane.b32.xlu2 %v2351_v34, %s2512_s23  ;;  %v2353_v40 = vpop.eup %2352 }
 0x71d   :  { %v906_v46 = vmul.f32 %v2353_v40, %v903_v35  ;;  %vm911_vm2 = vweird.f32 %v2353_v40  ;;  %v2355_v12 = vpop.eup %2354  ;;  %v937_v35 = vrot.slane %v3010_v52, 6 }
 0x71e   :  { %vm912_vm4 = vmor %vm910_vm3, %vm911_vm2  ;;  %v807_v59 = vadd.f32 1.0, %v2355_v12 }
 0x71f   :  { %v907_v56 = vsub.f32 1.0, %v906_v46 }
 0x720   :  { %2356 = vrcp.f32 %v807_v59  ;;  %v820_v24 = vand.u32 2147483648, %v807_v59  ;;  %vm814_vm7 = vweird.f32 %v807_v59  ;;  %v818_v0 = vand.u32 2147483647, %v807_v59 }
 0x721   :  { %v908_v53 = vmul.f32 %v2353_v40, %v907_v56 }
 0x722   :  { %v821_v28 = vor.u32 1.1754944e-38, %v820_v24  ;;  %vm819_vm9 = vcmp.eq.f32.partialorder %v818_v0, 8.507059e+37  ;;  %v2154_v0 = vmul.f32 -1.442695, %v3052_v27 }
 0x723   :  { %v909_v60 = vadd.f32 %v2353_v40, %v908_v53 }
 0x725   :  { %v913_v61 = vsel %vm912_vm4, %v2353_v40, %v909_v60  ;;  %v2158_v60 = vmul.f32 -1.442695, %v3046_v49 }
 0x726   :  { %v918_v55 = vsel %vm915_vm5, %v917_v62, %v913_v61  ;;  %v2357_v16 = vpop.eup %2356 }
 0x727   :  { %v810_v1 = vmul.f32 %v2357_v16, %v807_v59  ;;  %vm815_vm6 = vweird.f32 %v2357_v16  ;;  %v939_v40 = vmul.f32 %v937_v35, %v918_v55 }
 0x728   :  { %vm816_vm8 = vmor %vm814_vm7, %vm815_vm6 }
 0x729   :  { %v811_v17 = vsub.f32 1.0, %v810_v1 }
 0x72b   :  { %v812_v19 = vmul.f32 %v2357_v16, %v811_v17 }
 0x72d   :  { %v813_v20 = vadd.f32 %v2357_v16, %v812_v19 }
 0x72f   :  { %v817_v47 = vsel %vm816_vm8, %v2357_v16, %v813_v20 }
 0x730   :  { %v822_v25 = vsel %vm819_vm9, %v821_v28, %v817_v47 }
 0x731   :  { %v840_v9 = vmul.f32 %v822_v25, %v3007_v32 }
 0x73b   :  { %v942_v63 = vpop.permute.xlu1 %941 }
 0x73c   :  { %v944_v5 = vmul.f32 %v942_v63, %v918_v55 }
 0x73e   :  { %946 = vrot.lane.b32.xlu2 %v944_v5, %s2512_s23 }
 0x776   :  { %v843_v33 = vpop.permute.xlu2 %842 }
 0x777   :  { %v845_v34 = vmul.f32 %v843_v33, %v822_v25 }
 0x779   :  { %847 = vrot.lane.b32.xlu0 %v845_v34, %s2512_s23 }
 0x798   :  { %v947_v46 = vpop.permute.xlu2 %946 }
 0x799   :  { %v3060_v56 = vadd.f32 %v947_v46, %v939_v40 }
 0x79b   :  { %2358 = vtanh.f32 %v3060_v56 }
 0x79c   :  { %2360 = vpow2.f32 %v2158_v60 }
 0x7a1   :  { %v2359_v53 = vpop.eup %2358 }
 0x7a2   :  { %952 = vrot.lane.b32.xlu1 %v2359_v53, %s2512_s23  ;;  %v2361_v52 = vpop.eup %2360 }
 0x7a3   :  { %v904_v55 = vadd.f32 1.0, %v2361_v52 }
 0x7a5   :  { %v931_v49 = vand.u32 2147483648, %v904_v55  ;;  %vm925_vm12 = vweird.f32 %v904_v55  ;;  %v929_v32 = vand.u32 2147483647, %v904_v55 }
 0x7a7   :  { %v932_v16 = vor.u32 1.1754944e-38, %v931_v49  ;;  %vm930_vm14 = vcmp.eq.f32.partialorder %v929_v32, 8.507059e+37 }
 0x7eb   :  { %v848_v8 = vpop.permute.xlu0 %847 }
 0x7ec   :  { %v3066_v61 = vadd.f32 %v848_v8, %v840_v9 }
 0x7ee   :  { %2362 = vtanh.f32 %v3066_v61 }
 0x7ef   :  { %2364 = vrcp.f32 %v904_v55 }
 0x7f0   :  { %2366 = vpow2.f32 %v2154_v0 }
 0x7f4   :  { %v2363_v62 = vpop.eup %2362 }
 0x7f5   :  { %853 = vrot.lane.b32.xlu0 %v2363_v62, %s2512_s23  ;;  %v2365_v63 = vpop.eup %2364 }
 0x7f6   :  { %v921_v5 = vmul.f32 %v2365_v63, %v904_v55  ;;  %vm926_vm10 = vweird.f32 %v2365_v63  ;;  %v2367_v47 = vpop.eup %2366  ;;  %v3085_v55 = vadd.f32 %v2927_v41, %v120_v45  ;;  %v3112_v45 = vadd.f32 %v2929_v43, %v119_v54 }
 0x7f7   :  { %vm927_vm13 = vmor %vm925_vm12, %vm926_vm10  ;;  %v808_v28 = vadd.f32 1.0, %v2367_v47 }
 0x7f8   :  { %v922_v7 = vsub.f32 1.0, %v921_v5 }
 0x7f9   :  { %2368 = vrcp.f32 %v808_v28  ;;  %v835_v46 = vand.u32 2147483648, %v808_v28  ;;  %vm829_vm1 = vweird.f32 %v808_v28  ;;  %v833_v53 = vand.u32 2147483647, %v808_v28 }
 0x7fa   :  { %v923_v10 = vmul.f32 %v2365_v63, %v922_v7 }
 0x7fb   :  { %v836_v9 = vor.u32 1.1754944e-38, %v835_v46  ;;  %vm834_vm3 = vcmp.eq.f32.partialorder %v833_v53, 8.507059e+37 }
 0x7fc   :  { %v924_v12 = vadd.f32 %v2365_v63, %v923_v10 }
 0x7fe   :  { %v928_v59 = vsel %vm927_vm13, %v2365_v63, %v924_v12 }
 0x7ff   :  { %v933_v1 = vsel %vm930_vm14, %v932_v16, %v928_v59  ;;  %v2369_v33 = vpop.eup %2368 }
 0x800   :  { %v825_v25 = vmul.f32 %v2369_v33, %v808_v28  ;;  %vm830_vm15 = vweird.f32 %v2369_v33 }
 0x801   :  { %vm831_vm2 = vmor %vm829_vm1, %vm830_vm15 }
 0x802   :  { %v826_v34 = vsub.f32 1.0, %v825_v25 }
 0x804   :  { %v827_v35 = vmul.f32 %v2369_v33, %v826_v34 }
 0x806   :  { %v828_v40 = vadd.f32 %v2369_v33, %v827_v35 }
 0x808   :  { %v832_v60 = vsel %vm831_vm2, %v2369_v33, %v828_v40 }
 0x809   :  { %v837_v8 = vsel %vm834_vm3, %v836_v9, %v832_v60 }
 0x814   :  { %v953_v17 = vpop.permute.xlu1 %952 }
 0x815   :  { %v955_v19 = vmul.f32 %v953_v17, %v933_v1 }
 0x817   :  { %v1048_v20 = vpack.c.bf16 %v955_v19, %v955_v19 }
 0x819   :  { %v1050_v24 = vrot.slane %v1048_v20, 3 }
 0x81b   :  { %2161 = vmatmul.msk.bf16.vlgmr.msra.gmra.mxu0 %vm225_vm11, %v1050_v24  ;;  %2162 = vmatmul.msk.bf16.vlgmr.msra.gmra.mxu1 %vm225_vm11, %v1050_v24 }
 0x81c   :  { %1428 = vmatpush.bf16.msra.mxu0 %v2642_v22  ;;  %1441 = vmatpush.bf16.msra.mxu1 %v2609_v3 }
 0x820   :  { %1429 = vmatpush.bf16.msra.mxu0 %v2663_v31  ;;  %1442 = vmatpush.bf16.msra.mxu1 %v2619_v11 }
 0x824   :  { %1430 = vmatpush.bf16.msra.mxu0 %v2681_v39  ;;  %1443 = vmatpush.bf16.msra.mxu1 %v2651_v26 }
 0x828   :  { %1431 = vmatpush.bf16.msra.mxu0 %v2692_v42  ;;  %1444 = vmatpush.bf16.msra.mxu1 %v2678_v38 }
 0x867   :  { %v854_v52 = vpop.permute.xlu0 %853 }
 0x868   :  { %v856_v27 = vmul.f32 %v854_v52, %v837_v8 }
 0x86a   :  { %v957_v62 = vrot.slane %v856_v27, 2 }
 0x86c   :  { %958 = vrot.lane.b32.xlu2 %v957_v62, %s2512_s23 }
 0x898   :  { %v1063_v63 = vpop.f32.mrf.mxu0  ;;  %v1076_v5 = vpop.f32.mrf.mxu1 }
 0x899   :  { %v3088_v7 = vadd.f32 %v1076_v5, %v3085_v55  ;;  %v1080_v41 = vadd.f32 %v1063_v63, %v3112_v45 }
 0x89b   :  { %2370 = vtanh.f32 %v3088_v7  ;;  %v2163_v17 = vmul.f32 -1.442695, %v1080_v41 }
 0x89d   :  { %2372 = vpow2.f32 %v2163_v17 }
 0x8a0   :  { %v1065_v10 = vpop.f32.mrf.mxu0  ;;  %v1078_v12 = vpop.f32.mrf.mxu1 }
 0x8a1   :  { %v2371_v49 = vpop.eup %2370 }
 0x8a2   :  { %1126 = vrot.lane.b32.xlu1 %v2371_v49, %s2512_s23 }
 0x8c6   :  { %v959_v32 = vpop.permute.xlu2 %958 }
 0x8c7   :  { %v961_v59 = vsel %vm225_vm11, %v955_v19, %v959_v32  ;;  %v2373_v19 = vpop.eup %2372 }
 0x8c8   :  { %v962_v16 = vpack.c.bf16 %v961_v59, %v961_v59  ;;  %v1088_v20 = vadd.f32 1.0, %v2373_v19 }
 0x8ca   :  { %v964_v1 = vrot.slane %v962_v16, 3  ;;  %2374 = vrcp.f32 %v1088_v20  ;;  %v1101_v40 = vand.u32 2147483648, %v1088_v20  ;;  %vm1095_vm5 = vweird.f32 %v1088_v20 }
 0x8cb   :  { %v1099_v46 = vand.u32 2147483647, %v1088_v20 }
 0x8cc   :  { %974 = vmatmul.bf16.vlgmr.msra.gmra.mxu2 %v964_v1  ;;  %987 = vmatmul.bf16.vlgmr.msra.gmra.mxu3 %v964_v1  ;;  %v1102_v9 = vor.u32 1.1754944e-38, %v1101_v40 }
 0x8cd   :  { %1336 = vmatpush.bf16.msra.mxu2 %v2735_v14  ;;  %1349 = vmatpush.bf16.msra.mxu3 %v2746_v18  ;;  %vm1100_vm7 = vcmp.eq.f32.partialorder %v1099_v46, 8.507059e+37 }
 0x8d0   :  { %v2375_v24 = vpop.eup %2374 }
 0x8d1   :  { %1337 = vmatpush.bf16.msra.mxu2 %v2755_v21  ;;  %1350 = vmatpush.bf16.msra.mxu3 %v2759_v23  ;;  %v1091_v0 = vmul.f32 %v2375_v24, %v1088_v20  ;;  %vm1096_vm4 = vweird.f32 %v2375_v24 }
 0x8d2   :  { %vm1097_vm6 = vmor %vm1095_vm5, %vm1096_vm4 }
 0x8d3   :  { %v1092_v47 = vsub.f32 1.0, %v1091_v0  ;;  %v1122_v0 = vrot.slane %v3060_v56, 6 }
 0x8d5   :  { %1338 = vmatpush.bf16.msra.mxu2 %v2775_v29  ;;  %1351 = vmatpush.bf16.msra.mxu3 %v2779_v30  ;;  %v1093_v44 = vmul.f32 %v2375_v24, %v1092_v47 }
 0x8d7   :  { %v1094_v54 = vadd.f32 %v2375_v24, %v1093_v44 }
 0x8d9   :  { %1339 = vmatpush.bf16.msra.mxu2 %v2795_v36  ;;  %1352 = vmatpush.bf16.msra.mxu3 %v2799_v37  ;;  %v1098_v53 = vsel %vm1097_vm6, %v2375_v24, %v1094_v54  ;;  %v2164_v54 = vmul.f32 -1.442695, %v3088_v7 }
 0x8da   :  { %v1103_v8 = vsel %vm1100_vm7, %v1102_v9, %v1098_v53 }
 0x8db   :  { %v1124_v47 = vmul.f32 %v1122_v0, %v1103_v8 }
 0x8dd   :  { %1340 = vmatpush.bf16.msra.mxu2 %v2815_v48  ;;  %1353 = vmatpush.bf16.msra.mxu3 %v2819_v50 }
 0x8e1   :  { %1341 = vmatpush.bf16.msra.mxu2 %v2835_v57  ;;  %1354 = vmatpush.bf16.msra.mxu3 %v2839_v58 }
 0x8e5   :  { %1342 = vmatpush.bf16.msra.mxu2 %v2857_v2  ;;  %1355 = vmatpush.bf16.msra.mxu3 %v2861_v4 }
 0x8e9   :  { %1343 = vmatpush.bf16.msra.mxu2 %v2880_v13  ;;  %1356 = vmatpush.bf16.msra.mxu3 %v2885_v15 }
 0x914   :  { %v1127_v60 = vpop.permute.xlu1 %1126 }
 0x915   :  { %v1129_v52 = vmul.f32 %v1127_v60, %v1103_v8 }
 0x94f   :  { %v975_v28 = vpop.f32.mrf.mxu2  ;;  %v988_v33 = vpop.f32.mrf.mxu3 }
 0x950   :  { %v3116_v25 = vadd.f32 %v988_v33, %v2934_v51  ;;  %v976_v27 = vadd.f32 %v975_v28, %v2941_v6 }
 0x952   :  { %2376 = vtanh.f32 %v3116_v25  ;;  %v2159_v62 = vmul.f32 -1.442695, %v976_v27 }
 0x954   :  { %2378 = vpow2.f32 %v2159_v62 }
 0x957   :  { %v977_v43 = vpop.f32.mrf.mxu2  ;;  %v990_v34 = vpop.f32.mrf.mxu3 }
 0x958   :  { %v2377_v35 = vpop.eup %2376 }
 0x959   :  { %1033 = vrot.lane.b32.xlu0 %v2377_v35, %s2512_s23 }
 0x95a   :  { %v2379_v63 = vpop.eup %2378 }
 0x95b   :  { %v998_v5 = vadd.f32 1.0, %v2379_v63 }
 0x95d   :  { %2380 = vrcp.f32 %v998_v5  ;;  %v1011_v16 = vand.u32 2147483648, %v998_v5  ;;  %vm1005_vm9 = vweird.f32 %v998_v5  ;;  %v1009_v1 = vand.u32 2147483647, %v998_v5 }
 0x95f   :  { %v1012_v17 = vor.u32 1.1754944e-38, %v1011_v16  ;;  %vm1010_vm12 = vcmp.eq.f32.partialorder %v1009_v1, 8.507059e+37 }
 0x961   :  { %1131 = vrot.lane.b32.xlu0 %v1129_v52, %s2512_s23 }
 0x963   :  { %v2381_v10 = vpop.eup %2380 }
 0x964   :  { %v1001_v12 = vmul.f32 %v2381_v10, %v998_v5  ;;  %vm1006_vm8 = vweird.f32 %v2381_v10 }
 0x965   :  { %vm1007_vm10 = vmor %vm1005_vm9, %vm1006_vm8 }
 0x966   :  { %v1002_v49 = vsub.f32 1.0, %v1001_v12 }
 0x968   :  { %v1003_v32 = vmul.f32 %v2381_v10, %v1002_v49  ;;  %v2160_v49 = vmul.f32 -1.442695, %v3116_v25 }
 0x96a   :  { %v1004_v59 = vadd.f32 %v2381_v10, %v1003_v32 }
 0x96c   :  { %v1008_v41 = vsel %vm1007_vm10, %v2381_v10, %v1004_v59 }
 0x96d   :  { %v1013_v20 = vsel %vm1010_vm12, %v1012_v17, %v1008_v41 }
 0x96e   :  { %v1031_v46 = vmul.f32 %v1013_v20, %v3066_v61 }
 0x9cb   :  { %v1034_v19 = vpop.permute.xlu0 %1033 }
 0x9cc   :  { %v1036_v24 = vmul.f32 %v1034_v19, %v1013_v20 }
 0x9ce   :  { %1038 = vrot.lane.b32.xlu2 %v1036_v24, %s2512_s23 }
 0x9d3   :  { %v1132_v28 = vpop.permute.xlu0 %1131 }
 0x9d4   :  { %v3124_v33 = vadd.f32 %v1132_v28, %v1124_v47 }
 0x9d6   :  { %2382 = vtanh.f32 %v3124_v33 }
 0x9d7   :  { %2384 = vpow2.f32 %v2164_v54 }
 0x9dc   :  { %v2383_v44 = vpop.eup %2382 }
 0x9dd   :  { %1137 = vrot.lane.b32.xlu2 %v2383_v44, %s2512_s23  ;;  %v2385_v43 = vpop.eup %2384 }
 0x9de   :  { %v1089_v34 = vadd.f32 1.0, %v2385_v43 }
 0x9e0   :  { %2386 = vrcp.f32 %v1089_v34  ;;  %v1116_v27 = vand.u32 2147483648, %v1089_v34  ;;  %vm1110_vm14 = vweird.f32 %v1089_v34  ;;  %v1114_v7 = vand.u32 2147483647, %v1089_v34 }
 0x9e2   :  { %v1117_v63 = vor.u32 1.1754944e-38, %v1116_v27  ;;  %vm1115_vm1 = vcmp.eq.f32.partialorder %v1114_v7, 8.507059e+37 }
 0x9e6   :  { %v2387_v35 = vpop.eup %2386 }
 0x9e7   :  { %v1106_v40 = vmul.f32 %v2387_v35, %v1089_v34  ;;  %vm1111_vm13 = vweird.f32 %v2387_v35 }
 0x9e8   :  { %vm1112_vm15 = vmor %vm1110_vm14, %vm1111_vm13 }
 0x9e9   :  { %v1107_v53 = vsub.f32 1.0, %v1106_v40 }
 0x9eb   :  { %v1108_v9 = vmul.f32 %v2387_v35, %v1107_v53 }
 0x9ed   :  { %v1109_v8 = vadd.f32 %v2387_v35, %v1108_v9 }
 0x9ef   :  { %v1113_v62 = vsel %vm1112_vm15, %v2387_v35, %v1109_v8 }
 0x9f0   :  { %v1118_v61 = vsel %vm1115_vm1, %v1117_v63, %v1113_v62 }
 0xa28   :  { %v1039_v56 = vpop.permute.xlu2 %1038 }
 0xa29   :  { %v3130_v60 = vadd.f32 %v1039_v56, %v1031_v46 }
 0xa2b   :  { %2388 = vtanh.f32 %v3130_v60 }
 0xa2c   :  { %2390 = vpow2.f32 %v2160_v49 }
 0xa31   :  { %v2389_v52 = vpop.eup %2388 }
 0xa32   :  { %1044 = vrot.lane.b32.xlu1 %v2389_v52, %s2512_s23  ;;  %v2391_v32 = vpop.eup %2390 }
 0xa33   :  { %v999_v59 = vadd.f32 1.0, %v2391_v32 }
 0xa35   :  { %2392 = vrcp.f32 %v999_v59  ;;  %vm1020_vm3 = vweird.f32 %v999_v59 }
 0xa37   :  { %v1138_v5 = vpop.permute.xlu2 %1137 }
 0xa38   :  { %v1140_v10 = vmul.f32 %v1138_v5, %v1118_v61 }
 0xa3a   :  { %v1229_v12 = vpack.c.bf16 %v1140_v10, %v1140_v10 }
 0xa3c   :  { %2167 = vmatmul.msk.bf16.vlgmr.msrb.gmra.mxu2 %vm225_vm11, %v1229_v12  ;;  %2168 = vmatmul.msk.bf16.vlgmr.msrb.gmra.mxu3 %vm225_vm11, %v1229_v12 }
 0xa3d   :  { %1619 = vmatpush.bf16.msrb.mxu2 %v2642_v22  ;;  %1632 = vmatpush.bf16.msrb.mxu3 %v2609_v3  ;;  %v2393_v22 = vpop.eup %2392 }
 0xa3e   :  { %v1016_v3 = vmul.f32 %v2393_v22, %v999_v59  ;;  %vm1021_vm2 = vweird.f32 %v2393_v22 }
 0xa3f   :  { %vm1022_vm4 = vmor %vm1020_vm3, %vm1021_vm2 }
 0xa40   :  { %v1017_v16 = vsub.f32 1.0, %v1016_v3 }
 0xa41   :  { %1620 = vmatpush.bf16.msrb.mxu2 %v2663_v31  ;;  %1633 = vmatpush.bf16.msrb.mxu3 %v2619_v11  ;;  %v1026_v11 = vand.u32 2147483648, %v999_v59 }
 0xa42   :  { %v1018_v31 = vmul.f32 %v2393_v22, %v1017_v16 }
 0xa44   :  { %v1019_v1 = vadd.f32 %v2393_v22, %v1018_v31 }
 0xa45   :  { %1621 = vmatpush.bf16.msrb.mxu2 %v2681_v39  ;;  %1634 = vmatpush.bf16.msrb.mxu3 %v2651_v26  ;;  %v1024_v39 = vand.u32 2147483647, %v999_v59 }
 0xa46   :  { %v1023_v26 = vsel %vm1022_vm4, %v2393_v22, %v1019_v1 }
 0xa47   :  { %vm1025_vm5 = vcmp.eq.f32.partialorder %v1024_v39, 8.507059e+37 }
 0xa49   :  { %1622 = vmatpush.bf16.msrb.mxu2 %v2692_v42  ;;  %1635 = vmatpush.bf16.msrb.mxu3 %v2678_v38  ;;  %v1027_v42 = vor.u32 1.1754944e-38, %v1026_v11 }
 0xa4b   :  { %v1028_v38 = vsel %vm1025_vm5, %v1027_v42, %v1023_v26 }
 0xaa4   :  { %v1045_v41 = vpop.permute.xlu1 %1044 }
 0xaa5   :  { %v1047_v25 = vmul.f32 %v1045_v41, %v1028_v38 }
 0xaa7   :  { %1142 = vrot.lane.b32.xlu0 %v1047_v25, %s2512_s23 }
 0xabf   :  { %v1242_v17 = vpop.f32.mrf.mxu2  ;;  %v1255_v19 = vpop.f32.mrf.mxu3 }
 0xac0   :  { %v1262_v20 = vrot.slane %v1255_v19, 6  ;;  %v1261_v34 = vrot.slane %v1242_v17, 6 }
 0xac2   :  { %v3147_v24 = vadd.f32 %v1262_v20, %v3085_v55  ;;  %v1265_v35 = vadd.f32 %v1261_v34, %v3112_v45 }
 0xac4   :  { %2394 = vtanh.f32 %v3147_v24  ;;  %v2169_v40 = vmul.f32 -1.442695, %v1265_v35 }
 0xac6   :  { %2396 = vpow2.f32 %v2169_v40 }
 0xac7   :  { %v1244_v0 = vpop.f32.mrf.mxu2  ;;  %v1257_v47 = vpop.f32.mrf.mxu3 }
 0xaca   :  { %v2395_v28 = vpop.eup %2394 }
 0xacb   :  { %1311 = vrot.lane.b32.xlu0 %v2395_v28, %s2512_s23 }
 0xacc   :  { %v2397_v46 = vpop.eup %2396 }
 0xacd   :  { %v1273_v56 = vadd.f32 1.0, %v2397_v46  ;;  %v2170_v46 = vmul.f32 -1.442695, %v3147_v24 }
 0xacf   :  { %2398 = vrcp.f32 %v1273_v56  ;;  %v1286_v12 = vand.u32 2147483648, %v1273_v56  ;;  %vm1280_vm7 = vweird.f32 %v1273_v56  ;;  %v1284_v49 = vand.u32 2147483647, %v1273_v56 }
 0xad1   :  { %v1287_v59 = vor.u32 1.1754944e-38, %v1286_v12  ;;  %vm1285_vm9 = vcmp.eq.f32.partialorder %v1284_v49, 8.507059e+37 }
 0xad5   :  { %v2399_v53 = vpop.eup %2398 }
 0xad6   :  { %v1276_v9 = vmul.f32 %v2399_v53, %v1273_v56  ;;  %vm1281_vm6 = vweird.f32 %v2399_v53 }
 0xad7   :  { %vm1282_vm8 = vmor %vm1280_vm7, %vm1281_vm6 }
 0xad8   :  { %v1277_v8 = vsub.f32 1.0, %v1276_v9 }
 0xada   :  { %v1278_v62 = vmul.f32 %v2399_v53, %v1277_v8 }
 0xadc   :  { %v1279_v63 = vadd.f32 %v2399_v53, %v1278_v62 }
 0xade   :  { %v1283_v32 = vsel %vm1282_vm8, %v2399_v53, %v1279_v63 }
 0xadf   :  { %v1288_v3 = vsel %vm1285_vm9, %v1287_v59, %v1283_v32 }
 0xb19   :  { %v1143_v44 = vpop.permute.xlu0 %1142 }
 0xb1a   :  { %v1145_v54 = vsel %vm225_vm11, %v1140_v10, %v1143_v44 }
 0xb1b   :  { %v1146_v43 = vpack.c.bf16 %v1145_v54, %v1145_v54  ;;  %v1307_v54 = vrot.slane %v3124_v33, 6 }
 0xb1d   :  { %1155 = vmatmul.bf16.vlgmr.msrb.gmra.mxu0 %v1146_v43  ;;  %1168 = vmatmul.bf16.vlgmr.msrb.gmra.mxu1 %v1146_v43  ;;  %v1309_v43 = vmul.f32 %v1307_v54, %v1288_v3 }
 0xb1e   :  { %1527 = vmatpush.bf16.msrb.mxu0 %v2735_v14  ;;  %1540 = vmatpush.bf16.msrb.mxu1 %v2746_v18 }
 0xb22   :  { %1528 = vmatpush.bf16.msrb.mxu0 %v2755_v21  ;;  %1541 = vmatpush.bf16.msrb.mxu1 %v2759_v23 }
 0xb26   :  { %1529 = vmatpush.bf16.msrb.mxu0 %v2775_v29  ;;  %1542 = vmatpush.bf16.msrb.mxu1 %v2779_v30 }
 0xb2a   :  { %1530 = vmatpush.bf16.msrb.mxu0 %v2795_v36  ;;  %1543 = vmatpush.bf16.msrb.mxu1 %v2799_v37 }
 0xb2e   :  { %1531 = vmatpush.bf16.msrb.mxu0 %v2815_v48  ;;  %1544 = vmatpush.bf16.msrb.mxu1 %v2819_v50 }
 0xb32   :  { %1532 = vmatpush.bf16.msrb.mxu0 %v2835_v57  ;;  %1545 = vmatpush.bf16.msrb.mxu1 %v2839_v58 }
 0xb36   :  { %1533 = vmatpush.bf16.msrb.mxu0 %v2857_v2  ;;  %1546 = vmatpush.bf16.msrb.mxu1 %v2861_v4 }
 0xb3a   :  { %1534 = vmatpush.bf16.msrb.mxu0 %v2880_v13  ;;  %1547 = vmatpush.bf16.msrb.mxu1 %v2885_v15 }
 0xb3d   :  { %v1312_v22 = vpop.permute.xlu0 %1311 }
 0xb3e   :  { %v1314_v16 = vmul.f32 %v1312_v22, %v1288_v3 }
 0xb9a   :  { %v1156_v52 = vpop.f32.mrf.mxu0  ;;  %v1169_v27 = vpop.f32.mrf.mxu1 }
 0xb9b   :  { %v3170_v7 = vadd.f32 %v1169_v27, %v2934_v51  ;;  %v1157_v31 = vadd.f32 %v1156_v52, %v2941_v6 }
 0xb9d   :  { %2400 = vtanh.f32 %v3170_v7  ;;  %v2165_v1 = vmul.f32 -1.442695, %v1157_v31 }
 0xb9f   :  { %2402 = vpow2.f32 %v2165_v1 }
 0xba2   :  { %v1158_v61 = vpop.f32.mrf.mxu0  ;;  %v1171_v5 = vpop.f32.mrf.mxu1 }
 0xba3   :  { %v2401_v10 = vpop.eup %2400 }
 0xba4   :  { %1214 = vrot.lane.b32.xlu1 %v2401_v10, %s2512_s23 }
 0xba5   :  { %v2403_v11 = vpop.eup %2402 }
 0xba6   :  { %v1179_v39 = vadd.f32 1.0, %v2403_v11 }
 0xba8   :  { %2404 = vrcp.f32 %v1179_v39  ;;  %v1192_v17 = vand.u32 2147483648, %v1179_v39  ;;  %vm1186_vm12 = vweird.f32 %v1179_v39  ;;  %v1190_v19 = vand.u32 2147483647, %v1179_v39 }
 0xbaa   :  { %v1193_v0 = vor.u32 1.1754944e-38, %v1192_v17  ;;  %vm1191_vm14 = vcmp.eq.f32.partialorder %v1190_v19, 8.507059e+37 }
 0xbac   :  { %1316 = vrot.lane.b32.xlu1 %v1314_v16, %s2512_s23  ;;  %v2166_v16 = vmul.f32 -1.442695, %v3170_v7 }
 0xbae   :  { %v2405_v26 = vpop.eup %2404 }
 0xbaf   :  { %v1182_v42 = vmul.f32 %v2405_v26, %v1179_v39  ;;  %vm1187_vm10 = vweird.f32 %v2405_v26 }
 0xbb0   :  { %vm1188_vm13 = vmor %vm1186_vm12, %vm1187_vm10 }
 0xbb1   :  { %v1183_v38 = vsub.f32 1.0, %v1182_v42 }
 0xbb3   :  { %v1184_v41 = vmul.f32 %v2405_v26, %v1183_v38 }
 0xbb5   :  { %v1185_v25 = vadd.f32 %v2405_v26, %v1184_v41 }
 0xbb7   :  { %v1189_v20 = vsel %vm1188_vm13, %v2405_v26, %v1185_v25 }
 0xbb8   :  { %v1194_v28 = vsel %vm1191_vm14, %v1193_v0, %v1189_v20 }
 0xbb9   :  { %v1212_v56 = vmul.f32 %v1194_v28, %v3130_v60 }
 0xc16   :  { %v1215_v47 = vpop.permute.xlu1 %1214 }
 0xc17   :  { %v1217_v44 = vmul.f32 %v1215_v47, %v1194_v28 }
 0xc19   :  { %1219 = vrot.lane.b32.xlu2 %v1217_v44, %s2512_s23 }
 0xc1e   :  { %v1317_v34 = vpop.permute.xlu1 %1316 }
 0xc1f   :  { %v3178_v35 = vadd.f32 %v1317_v34, %v1309_v43 }
 0xc21   :  { %2406 = vtanh.f32 %v3178_v35 }
 0xc22   :  { %2408 = vpow2.f32 %v2170_v46 }
 0xc27   :  { %v2407_v40 = vpop.eup %2406 }
 0xc28   :  { %1322 = vrot.lane.b32.xlu0 %v2407_v40, %s2512_s23  ;;  %v2409_v33 = vpop.eup %2408 }
 0xc29   :  { %v1274_v8 = vadd.f32 1.0, %v2409_v33 }
 0xc2b   :  { %v1301_v24 = vand.u32 2147483648, %v1274_v8  ;;  %vm1295_vm1 = vweird.f32 %v1274_v8  ;;  %v1299_v60 = vand.u32 2147483647, %v1274_v8 }
 0xc2d   :  { %v1302_v12 = vor.u32 1.1754944e-38, %v1301_v24  ;;  %vm1300_vm3 = vcmp.eq.f32.partialorder %v1299_v60, 8.507059e+37 }
 0xc73   :  { %v1220_v53 = vpop.permute.xlu2 %1219 }
 0xc74   :  { %v3184_v9 = vadd.f32 %v1220_v53, %v1212_v56 }
 0xc76   :  { %2410 = vtanh.f32 %v3184_v9 }
 0xc77   :  { %2412 = vrcp.f32 %v1274_v8 }
 0xc78   :  { %2414 = vpow2.f32 %v2166_v16 }
 0xc7c   :  { %v2411_v52 = vpop.eup %2410 }
 0xc7d   :  { %1225 = vrot.lane.b32.xlu2 %v2411_v52, %s2512_s23  ;;  %v2413_v27 = vpop.eup %2412 }
 0xc7e   :  { %v1291_v62 = vmul.f32 %v2413_v27, %v1274_v8  ;;  %vm1296_vm15 = vweird.f32 %v2413_v27  ;;  %v2415_v31 = vpop.eup %2414 }
 0xc7f   :  { %vm1297_vm2 = vmor %vm1295_vm1, %vm1296_vm15  ;;  %v1180_v1 = vadd.f32 1.0, %v2415_v31 }
 0xc80   :  { %v1292_v63 = vsub.f32 1.0, %v1291_v62 }
 0xc81   :  { %2416 = vrcp.f32 %v1180_v1  ;;  %v1207_v41 = vand.u32 2147483648, %v1180_v1  ;;  %vm1201_vm5 = vweird.f32 %v1180_v1  ;;  %v1205_v25 = vand.u32 2147483647, %v1180_v1 }
 0xc82   :  { %v1293_v61 = vmul.f32 %v2413_v27, %v1292_v63 }
 0xc83   :  { %v1208_v19 = vor.u32 1.1754944e-38, %v1207_v41  ;;  %vm1206_vm7 = vcmp.eq.f32.partialorder %v1205_v25, 8.507059e+37  ;;  %v1498_v41 = vrot.slane %v3178_v35, 6 }
 0xc84   :  { %v1294_v5 = vadd.f32 %v2413_v27, %v1293_v61 }
 0xc86   :  { %v1298_v10 = vsel %vm1297_vm2, %v2413_v27, %v1294_v5 }
 0xc87   :  { %v1303_v49 = vsel %vm1300_vm3, %v1302_v12, %v1298_v10  ;;  %v2417_v11 = vpop.eup %2416 }
 0xc88   :  { %v1197_v39 = vmul.f32 %v2417_v11, %v1180_v1  ;;  %vm1202_vm4 = vweird.f32 %v2417_v11 }
 0xc89   :  { %vm1203_vm6 = vmor %vm1201_vm5, %vm1202_vm4 }
 0xc8a   :  { %v1198_v26 = vsub.f32 1.0, %v1197_v39 }
 0xc8c   :  { %v1199_v42 = vmul.f32 %v2417_v11, %v1198_v26 }
 0xc8e   :  { %v1200_v38 = vadd.f32 %v2417_v11, %v1199_v42 }
 0xc90   :  { %v1204_v17 = vsel %vm1203_vm6, %v2417_v11, %v1200_v38 }
 0xc91   :  { %v1209_v20 = vsel %vm1206_vm7, %v1208_v19, %v1204_v17 }
 0xc9a   :  { %v1323_v32 = vpop.permute.xlu0 %1322 }
 0xc9b   :  { %v1325_v59 = vmul.f32 %v1323_v32, %v1303_v49 }
 0xc9d   :  { %v1418_v22 = vpack.c.bf16 %v1325_v59, %v1325_v59 }
 0xc9f   :  { %v1420_v3 = vrot.slane %v1418_v22, 1 }
 0xca1   :  { %2173 = vmatmul.msk.bf16.vlgmr.msra.gmra.mxu0 %vm225_vm11, %v1420_v3  ;;  %2174 = vmatmul.msk.bf16.vlgmr.msra.gmra.mxu1 %vm225_vm11, %v1420_v3 }
 0xcd7   :  { %v1226_v0 = vpop.permute.xlu2 %1225 }
 0xcd8   :  { %v1228_v7 = vmul.f32 %v1226_v0, %v1209_v20 }
 0xcda   :  { %v1327_v47 = vrot.slane %v1228_v7, 6 }
 0xcdc   :  { %1328 = vrot.lane.b32.xlu1 %v1327_v47, %s2512_s23 }
 0xd1e   :  { %v1433_v28 = vpop.f32.mrf.mxu0  ;;  %v1446_v44 = vpop.f32.mrf.mxu1 }
 0xd1f   :  { %v1453_v54 = vrot.slane %v1446_v44, 4 }
 0xd21   :  { %v3193_v43 = vadd.f32 %v1453_v54, %v3085_v55 }
 0xd23   :  { %2418 = vtanh.f32 %v3193_v43  ;;  %v2176_v0 = vmul.f32 -1.442695, %v3193_v43 }
 0xd26   :  { %v1435_v34 = vpop.f32.mrf.mxu0  ;;  %v1448_v40 = vpop.f32.mrf.mxu1 }
 0xd29   :  { %v2419_v46 = vpop.eup %2418 }
 0xd2a   :  { %1502 = vrot.lane.b32.xlu1 %v2419_v46, %s2512_s23 }
 0xd4e   :  { %v1329_v56 = vpop.permute.xlu1 %1328 }
 0xd4f   :  { %v1331_v53 = vsel %vm225_vm11, %v1325_v59, %v1329_v56 }
 0xd50   :  { %v1332_v33 = vpack.c.bf16 %v1331_v53, %v1331_v53 }
 0xd52   :  { %v1334_v8 = vrot.slane %v1332_v33, 1 }
 0xd54   :  { %1344 = vmatmul.bf16.vlgmr.msra.gmra.mxu2 %v1334_v8  ;;  %1357 = vmatmul.bf16.vlgmr.msra.gmra.mxu3 %v1334_v8 }
 0xd55   :  { %1718 = vmatpush.bf16.msra.mxu2 %v2735_v14  ;;  %1731 = vmatpush.bf16.msra.mxu3 %v2746_v18  ;;  %v1452_v14 = vrot.slane %v1433_v28, 4 }
 0xd57   :  { %v1456_v18 = vadd.f32 %v1452_v14, %v3112_v45 }
 0xd59   :  { %1719 = vmatpush.bf16.msra.mxu2 %v2755_v21  ;;  %1732 = vmatpush.bf16.msra.mxu3 %v2759_v23  ;;  %v2175_v21 = vmul.f32 -1.442695, %v1456_v18 }
 0xd5b   :  { %2420 = vpow2.f32 %v2175_v21 }
 0xd5d   :  { %1720 = vmatpush.bf16.msra.mxu2 %v2775_v29  ;;  %1733 = vmatpush.bf16.msra.mxu3 %v2779_v30 }
 0xd61   :  { %1721 = vmatpush.bf16.msra.mxu2 %v2795_v36  ;;  %1734 = vmatpush.bf16.msra.mxu3 %v2799_v37  ;;  %v2421_v23 = vpop.eup %2420 }
 0xd62   :  { %v1464_v29 = vadd.f32 1.0, %v2421_v23 }
 0xd64   :  { %2422 = vrcp.f32 %v1464_v29  ;;  %v1477_v52 = vand.u32 2147483648, %v1464_v29  ;;  %vm1471_vm9 = vweird.f32 %v1464_v29  ;;  %v1475_v27 = vand.u32 2147483647, %v1464_v29 }
 0xd65   :  { %1722 = vmatpush.bf16.msra.mxu2 %v2815_v48  ;;  %1735 = vmatpush.bf16.msra.mxu3 %v2819_v50 }
 0xd66   :  { %v1478_v63 = vor.u32 1.1754944e-38, %v1477_v52  ;;  %vm1476_vm12 = vcmp.eq.f32.partialorder %v1475_v27, 8.507059e+37 }
 0xd69   :  { %1723 = vmatpush.bf16.msra.mxu2 %v2835_v57  ;;  %1736 = vmatpush.bf16.msra.mxu3 %v2839_v58 }
 0xd6a   :  { %v2423_v30 = vpop.eup %2422 }
 0xd6b   :  { %v1467_v36 = vmul.f32 %v2423_v30, %v1464_v29  ;;  %vm1472_vm8 = vweird.f32 %v2423_v30 }
 0xd6c   :  { %vm1473_vm10 = vmor %vm1471_vm9, %vm1472_vm8 }
 0xd6d   :  { %1724 = vmatpush.bf16.msra.mxu2 %v2857_v2  ;;  %1737 = vmatpush.bf16.msra.mxu3 %v2861_v4  ;;  %v1468_v37 = vsub.f32 1.0, %v1467_v36 }
 0xd6f   :  { %v1469_v58 = vmul.f32 %v2423_v30, %v1468_v37 }
 0xd71   :  { %1725 = vmatpush.bf16.msra.mxu2 %v2880_v13  ;;  %1738 = vmatpush.bf16.msra.mxu3 %v2885_v15  ;;  %v1470_v2 = vadd.f32 %v2423_v30, %v1469_v58 }
 0xd73   :  { %v1474_v62 = vsel %vm1473_vm10, %v2423_v30, %v1470_v2 }
 0xd74   :  { %v1479_v5 = vsel %vm1476_vm12, %v1478_v63, %v1474_v62 }
 0xd75   :  { %v1500_v25 = vmul.f32 %v1498_v41, %v1479_v5 }
 0xd9c   :  { %v1503_v61 = vpop.permute.xlu1 %1502 }
 0xd9d   :  { %v1505_v24 = vmul.f32 %v1503_v61, %v1479_v5 }
 0xdd7   :  { %v1345_v48 = vpop.f32.mrf.mxu2  ;;  %v1358_v50 = vpop.f32.mrf.mxu3 }
 0xdd8   :  { %v3216_v57 = vadd.f32 %v1358_v50, %v2934_v51  ;;  %v1346_v60 = vadd.f32 %v1345_v48, %v2941_v6 }
 0xdda   :  { %2424 = vtanh.f32 %v3216_v57  ;;  %v2171_v10 = vmul.f32 -1.442695, %v1346_v60  ;;  %v2172_v30 = vmul.f32 -1.442695, %v3216_v57 }
 0xddc   :  { %2426 = vpow2.f32 %v2171_v10 }
 0xddf   :  { %v1347_v4 = vpop.f32.mrf.mxu2  ;;  %v1360_v13 = vpop.f32.mrf.mxu3 }
 0xde0   :  { %v2425_v15 = vpop.eup %2424 }
 0xde1   :  { %1403 = vrot.lane.b32.xlu2 %v2425_v15, %s2512_s23 }
 0xde2   :  { %v2427_v12 = vpop.eup %2426 }
 0xde3   :  { %v1368_v49 = vadd.f32 1.0, %v2427_v12 }
 0xde5   :  { %2428 = vrcp.f32 %v1368_v49  ;;  %v1381_v31 = vand.u32 2147483648, %v1368_v49  ;;  %vm1375_vm14 = vweird.f32 %v1368_v49  ;;  %v1379_v1 = vand.u32 2147483647, %v1368_v49 }
 0xde7   :  { %v1382_v39 = vor.u32 1.1754944e-38, %v1381_v31  ;;  %vm1380_vm1 = vcmp.eq.f32.partialorder %v1379_v1, 8.507059e+37 }
 0xde9   :  { %1507 = vrot.lane.b32.xlu2 %v1505_v24, %s2512_s23 }
 0xdeb   :  { %v2429_v32 = vpop.eup %2428 }
 0xdec   :  { %v1371_v59 = vmul.f32 %v2429_v32, %v1368_v49  ;;  %vm1376_vm13 = vweird.f32 %v2429_v32 }
 0xded   :  { %vm1377_vm15 = vmor %vm1375_vm14, %vm1376_vm13 }
 0xdee   :  { %v1372_v22 = vsub.f32 1.0, %v1371_v59 }
 0xdf0   :  { %v1373_v3 = vmul.f32 %v2429_v32, %v1372_v22 }
 0xdf2   :  { %v1374_v16 = vadd.f32 %v2429_v32, %v1373_v3 }
 0xdf4   :  { %v1378_v11 = vsel %vm1377_vm15, %v2429_v32, %v1374_v16 }
 0xdf5   :  { %v1383_v42 = vsel %vm1380_vm1, %v1382_v39, %v1378_v11 }
 0xdf6   :  { %v1401_v54 = vmul.f32 %v1383_v42, %v3184_v9 }
 0xe3b   :  { %v1404_v26 = vpop.permute.xlu2 %1403 }
 0xe3c   :  { %v1406_v38 = vmul.f32 %v1404_v26, %v1383_v42 }
 0xe3e   :  { %1408 = vrot.lane.b32.xlu0 %v1406_v38, %s2512_s23 }
 0xe43   :  { %v1508_v17 = vpop.permute.xlu2 %1507 }
 0xe44   :  { %v3224_v19 = vadd.f32 %v1508_v17, %v1500_v25 }
 0xe46   :  { %2430 = vtanh.f32 %v3224_v19 }
 0xe47   :  { %2432 = vpow2.f32 %v2176_v0 }
 0xe4c   :  { %v2431_v20 = vpop.eup %2430 }
 0xe4d   :  { %1513 = vrot.lane.b32.xlu1 %v2431_v20, %s2512_s23  ;;  %v2433_v7 = vpop.eup %2432 }
 0xe4e   :  { %v1465_v47 = vadd.f32 1.0, %v2433_v7 }
 0xe50   :  { %2434 = vrcp.f32 %v1465_v47  ;;  %v1492_v33 = vand.u32 2147483648, %v1465_v47  ;;  %vm1486_vm3 = vweird.f32 %v1465_v47  ;;  %v1490_v43 = vand.u32 2147483647, %v1465_v47 }
 0xe52   :  { %v1493_v14 = vor.u32 1.1754944e-38, %v1492_v33  ;;  %vm1491_vm5 = vcmp.eq.f32.partialorder %v1490_v43, 8.507059e+37 }
 0xe56   :  { %v2435_v28 = vpop.eup %2434 }
 0xe57   :  { %v1482_v44 = vmul.f32 %v2435_v28, %v1465_v47  ;;  %vm1487_vm2 = vweird.f32 %v2435_v28 }
 0xe58   :  { %vm1488_vm4 = vmor %vm1486_vm3, %vm1487_vm2 }
 0xe59   :  { %v1483_v34 = vsub.f32 1.0, %v1482_v44 }
 0xe5b   :  { %v1484_v46 = vmul.f32 %v2435_v28, %v1483_v34 }
 0xe5d   :  { %v1485_v56 = vadd.f32 %v2435_v28, %v1484_v46 }
 0xe5f   :  { %v1489_v8 = vsel %vm1488_vm4, %v2435_v28, %v1485_v56 }
 0xe60   :  { %v1494_v9 = vsel %vm1491_vm5, %v1493_v14, %v1489_v8 }
 0xeb0   :  { %v1409_v35 = vpop.permute.xlu0 %1408 }
 0xeb1   :  { %v3230_v40 = vadd.f32 %v1409_v35, %v1401_v54 }
 0xeb3   :  { %2436 = vtanh.f32 %v3230_v40 }
 0xeb4   :  { %2438 = vpow2.f32 %v2172_v30 }
 0xeb9   :  { %v2437_v53 = vpop.eup %2436 }
 0xeba   :  { %1414 = vrot.lane.b32.xlu0 %v2437_v53, %s2512_s23  ;;  %v2439_v36 = vpop.eup %2438 }
 0xebb   :  { %v1369_v37 = vadd.f32 1.0, %v2439_v36 }
 0xebd   :  { %2440 = vrcp.f32 %v1369_v37  ;;  %v1396_v13 = vand.u32 2147483648, %v1369_v37  ;;  %vm1390_vm7 = vweird.f32 %v1369_v37  ;;  %v1394_v15 = vand.u32 2147483647, %v1369_v37 }
 0xebf   :  { %v1514_v18 = vpop.permute.xlu1 %1513  ;;  %v1397_v27 = vor.u32 1.1754944e-38, %v1396_v13  ;;  %vm1395_vm9 = vcmp.eq.f32.partialorder %v1394_v15, 8.507059e+37 }
 0xec0   :  { %v1516_v21 = vmul.f32 %v1514_v18, %v1494_v9 }
 0xec2   :  { %v1609_v23 = vpack.c.bf16 %v1516_v21, %v1516_v21 }
 0xec3   :  { %v2441_v48 = vpop.eup %2440 }
 0xec4   :  { %v1611_v29 = vrot.slane %v1609_v23, 2  ;;  %v1386_v50 = vmul.f32 %v2441_v48, %v1369_v37  ;;  %vm1391_vm6 = vweird.f32 %v2441_v48 }
 0xec5   :  { %vm1392_vm8 = vmor %vm1390_vm7, %vm1391_vm6 }
 0xec6   :  { %2179 = vmatmul.msk.bf16.vlgmr.msrb.gmra.mxu2 %vm225_vm11, %v1611_v29  ;;  %2180 = vmatmul.msk.bf16.vlgmr.msrb.gmra.mxu3 %vm225_vm11, %v1611_v29  ;;  %v1387_v58 = vsub.f32 1.0, %v1386_v50 }
 0xec8   :  { %v1388_v2 = vmul.f32 %v2441_v48, %v1387_v58 }
 0xeca   :  { %v1389_v4 = vadd.f32 %v2441_v48, %v1388_v2  ;;  %v1689_v2 = vrot.slane %v3224_v19, 6 }
 0xecc   :  { %v1393_v52 = vsel %vm1392_vm8, %v2441_v48, %v1389_v4 }
 0xecd   :  { %v1398_v62 = vsel %vm1395_vm9, %v1397_v27, %v1393_v52 }
 0xf2c   :  { %v1415_v63 = vpop.permute.xlu0 %1414 }
 0xf2d   :  { %v1417_v57 = vmul.f32 %v1415_v63, %v1398_v62 }
 0xf2f   :  { %v1518_v61 = vrot.slane %v1417_v57, 4 }
 0xf31   :  { %1519 = vrot.lane.b32.xlu2 %v1518_v61, %s2512_s23 }
 0xf49   :  { %v1624_v5 = vpop.f32.mrf.mxu2  ;;  %v1637_v24 = vpop.f32.mrf.mxu3 }
 0xf4a   :  { %v1644_v60 = vrot.slane %v1637_v24, 2  ;;  %v1643_v31 = vrot.slane %v1624_v5, 2 }
 0xf4c   :  { %v3239_v10 = vadd.f32 %v1644_v60, %v3085_v55  ;;  %v1647_v1 = vadd.f32 %v1643_v31, %v3112_v45 }
 0xf4e   :  { %2442 = vtanh.f32 %v3239_v10  ;;  %v2181_v11 = vmul.f32 -1.442695, %v1647_v1 }
 0xf50   :  { %2444 = vpow2.f32 %v2181_v11 }
 0xf51   :  { %v1626_v12 = vpop.f32.mrf.mxu2  ;;  %v1639_v49 = vpop.f32.mrf.mxu3 }
 0xf54   :  { %v2443_v32 = vpop.eup %2442 }
 0xf55   :  { %1693 = vrot.lane.b32.xlu2 %v2443_v32, %s2512_s23 }
 0xf56   :  { %v2445_v55 = vpop.eup %2444 }
 0xf57   :  { %v1655_v39 = vadd.f32 1.0, %v2445_v55  ;;  %v2182_v55 = vmul.f32 -1.442695, %v3239_v10 }
 0xf59   :  { %2446 = vrcp.f32 %v1655_v39  ;;  %v1668_v45 = vand.u32 2147483648, %v1655_v39  ;;  %vm1662_vm12 = vweird.f32 %v1655_v39  ;;  %v1666_v44 = vand.u32 2147483647, %v1655_v39 }
 0xf5b   :  { %v1669_v35 = vor.u32 1.1754944e-38, %v1668_v45  ;;  %vm1667_vm14 = vcmp.eq.f32.partialorder %v1666_v44, 8.507059e+37 }
 0xf5f   :  { %v2447_v26 = vpop.eup %2446 }
 0xf60   :  { %v1658_v42 = vmul.f32 %v2447_v26, %v1655_v39  ;;  %vm1663_vm10 = vweird.f32 %v2447_v26 }
 0xf61   :  { %vm1664_vm13 = vmor %vm1662_vm12, %vm1663_vm10 }
 0xf62   :  { %v1659_v38 = vsub.f32 1.0, %v1658_v42 }
 0xf64   :  { %v1660_v20 = vmul.f32 %v2447_v26, %v1659_v38 }
 0xf66   :  { %v1661_v0 = vadd.f32 %v2447_v26, %v1660_v20 }
 0xf68   :  { %v1665_v54 = vsel %vm1664_vm13, %v2447_v26, %v1661_v0 }
 0xf69   :  { %v1670_v46 = vsel %vm1667_vm14, %v1669_v35, %v1665_v54 }
 0xf6a   :  { %v1691_v4 = vmul.f32 %v1689_v2, %v1670_v46 }
 0xf8b   :  { %v1520_v59 = vpop.permute.xlu2 %1519 }
 0xf8c   :  { %v1522_v22 = vsel %vm225_vm11, %v1516_v21, %v1520_v59 }
 0xf8d   :  { %v1523_v3 = vpack.c.bf16 %v1522_v22, %v1522_v22 }
 0xf8f   :  { %v1525_v16 = vrot.slane %v1523_v3, 2 }
 0xf91   :  { %1535 = vmatmul.bf16.vlgmr.msrb.gmra.mxu0 %v1525_v16  ;;  %1548 = vmatmul.bf16.vlgmr.msrb.gmra.mxu1 %v1525_v16 }
 0xfaf   :  { %v1694_v34 = vpop.permute.xlu2 %1693 }
 0xfb0   :  { %v1696_v56 = vmul.f32 %v1694_v34, %v1670_v46 }
0x100e   :  { %v1536_v41 = vpop.f32.mrf.mxu0  ;;  %v1549_v25 = vpop.f32.mrf.mxu1 }
0x100f   :  { %v1550_v17 = vadd.f32 %v1549_v25, %v2934_v51  ;;  %v1537_v53 = vadd.f32 %v1536_v41, %v2941_v6 }
0x1011   :  { %2448 = vtanh.f32 %v1550_v17  ;;  %v2177_v33 = vmul.f32 -1.442695, %v1537_v53  ;;  %v2178_v61 = vmul.f32 -1.442695, %v1550_v17 }
0x1013   :  { %2450 = vpow2.f32 %v2177_v33 }
0x1016   :  { %v1538_v7 = vpop.f32.mrf.mxu0  ;;  %v1551_v47 = vpop.f32.mrf.mxu1 }
0x1017   :  { %v2449_v28 = vpop.eup %2448 }
0x1018   :  { %1594 = vrot.lane.b32.xlu0 %v2449_v28, %s2512_s23 }
0x1019   :  { %v2451_v43 = vpop.eup %2450 }
0x101a   :  { %v1559_v8 = vadd.f32 1.0, %v2451_v43 }
0x101c   :  { %2452 = vrcp.f32 %v1559_v8  ;;  %v1572_v29 = vand.u32 2147483648, %v1559_v8  ;;  %vm1566_vm1 = vweird.f32 %v1559_v8  ;;  %v1570_v30 = vand.u32 2147483647, %v1559_v8 }
0x101e   :  { %v1573_v37 = vor.u32 1.1754944e-38, %v1572_v29  ;;  %vm1571_vm3 = vcmp.eq.f32.partialorder %v1570_v30, 8.507059e+37 }
0x1020   :  { %1698 = vrot.lane.b32.xlu0 %v1696_v56, %s2512_s23 }
0x1022   :  { %v2453_v14 = vpop.eup %2452 }
0x1023   :  { %v1562_v9 = vmul.f32 %v2453_v14, %v1559_v8  ;;  %vm1567_vm15 = vweird.f32 %v2453_v14 }
0x1024   :  { %vm1568_vm2 = vmor %vm1566_vm1, %vm1567_vm15 }
0x1025   :  { %v1563_v18 = vsub.f32 1.0, %v1562_v9 }
0x1027   :  { %v1564_v21 = vmul.f32 %v2453_v14, %v1563_v18 }
0x1029   :  { %v1565_v23 = vadd.f32 %v2453_v14, %v1564_v21 }
0x102b   :  { %v1569_v36 = vsel %vm1568_vm2, %v2453_v14, %v1565_v23 }
0x102c   :  { %v1574_v50 = vsel %vm1571_vm3, %v1573_v37, %v1569_v36 }
0x102d   :  { %v1592_v27 = vmul.f32 %v1574_v50, %v3230_v40 }
0x108a   :  { %v1595_v48 = vpop.permute.xlu0 %1594 }
0x108b   :  { %v1597_v58 = vmul.f32 %v1595_v48, %v1574_v50 }
0x108d   :  { %1599 = vrot.lane.b32.xlu1 %v1597_v58, %s2512_s23 }
0x1092   :  { %v1699_v13 = vpop.permute.xlu0 %1698 }
0x1093   :  { %v1701_v15 = vadd.f32 %v1699_v13, %v1691_v4  ;;  %v2265_v13 = vld [vmem:[%s3349_s6 + $0x18] sm:$0xff] }
0x1094   :  { %1842 = vmatpush.bf16.msra.mxu0 %v2265_v13 }
0x1095   :  { %2454 = vtanh.f32 %v1701_v15  ;;  %v2264_v15 = vld [vmem:[%s3349_s6 + $0x10] sm:$0xff] }
0x1098   :  { %1843 = vmatpush.bf16.msra.mxu0 %v2264_v15  ;;  %v2282_v15 = vld [vmem:[%s3354_s11] ss:$0 sm:$0xff] }
0x109b   :  { %v2455_v52 = vpop.eup %2454 }
0x109c   :  { %1704 = vrot.lane.b32.xlu2 %v2455_v52, %s2512_s23  ;;  %v2263_v52 = vld [vmem:[%s3349_s6 + $0x8] sm:$0xff] }
0x109d   :  { %1844 = vmatpush.bf16.msra.mxu0 %v2263_v52 }
0x10f6   :  { %v1705_v28 = vpop.permute.xlu2 %1704 }
0x10ff   :  { %v1600_v62 = vpop.permute.xlu1 %1599 }
0x1100   :  { %v3253_v63 = vadd.f32 %v1600_v62, %v1592_v27 }
0x1102   :  { %2456 = vtanh.f32 %v3253_v63 }
0x1103   :  { %2458 = vpow2.f32 %v2178_v61 }
0x1108   :  { %v2457_v57 = vpop.eup %2456 }
0x1109   :  { %1605 = vrot.lane.b32.xlu1 %v2457_v57, %s2512_s23  ;;  %v2459_v19 = vpop.eup %2458 }
0x110a   :  { %v1560_v5 = vadd.f32 1.0, %v2459_v19 }
0x110c   :  { %2460 = vrcp.f32 %v1560_v5  ;;  %v1587_v40 = vand.u32 2147483648, %v1560_v5  ;;  %vm1581_vm5 = vweird.f32 %v1560_v5  ;;  %v1585_v59 = vand.u32 2147483647, %v1560_v5 }
0x110d   :  { %2462 = vpow2.f32 %v2182_v55 }
0x110e   :  { %v1588_v3 = vor.u32 1.1754944e-38, %v1587_v40  ;;  %vm1586_vm7 = vcmp.eq.f32.partialorder %v1585_v59, 8.507059e+37 }
0x1112   :  { %v2461_v24 = vpop.eup %2460 }
0x1113   :  { %v1577_v60 = vmul.f32 %v2461_v24, %v1560_v5  ;;  %vm1582_vm4 = vweird.f32 %v2461_v24  ;;  %v2463_v39 = vpop.eup %2462 }
0x1114   :  { %vm1583_vm6 = vmor %vm1581_vm5, %vm1582_vm4  ;;  %v1656_v26 = vadd.f32 1.0, %v2463_v39 }
0x1115   :  { %v1578_v12 = vsub.f32 1.0, %v1577_v60  ;;  %v2262_v60 = vld [vmem:[%s3349_s6] sm:$0xff] }
0x1116   :  { %2464 = vrcp.f32 %v1656_v26  ;;  %v1683_v20 = vand.u32 2147483648, %v1656_v26  ;;  %vm1677_vm9 = vweird.f32 %v1656_v26  ;;  %v1681_v0 = vand.u32 2147483647, %v1656_v26  ;;  %1845 = vmatpush.bf16.msra.mxu0 %v2262_v60 }
0x1117   :  { %v1579_v49 = vmul.f32 %v2461_v24, %v1578_v12 }
0x1118   :  { %v1684_v47 = vor.u32 1.1754944e-38, %v1683_v20  ;;  %vm1682_vm12 = vcmp.eq.f32.partialorder %v1681_v0, 8.507059e+37  ;;  %v2513_v0 = vmov 64.0  }
0x1119   :  { %v1580_v32 = vadd.f32 %v2461_v24, %v1579_v49 }
0x111b   :  { %v1584_v22 = vsel %vm1583_vm6, %v2461_v24, %v1580_v32  ;;  %vm1851_vm6 = vcmask 519168  }
0x111c   :  { %v1589_v16 = vsel %vm1586_vm7, %v1588_v3, %v1584_v22  ;;  %v2465_v42 = vpop.eup %2464 }
0x111d   :  { %v1673_v38 = vmul.f32 %v2465_v42, %v1656_v26  ;;  %vm1678_vm8 = vweird.f32 %v2465_v42 }
0x111e   :  { %vm1679_vm10 = vmor %vm1677_vm9, %vm1678_vm8 }
0x111f   :  { %v1674_v41 = vsub.f32 1.0, %v1673_v38  ;;  %v2279_v38 = vld [vmem:[%s3350_s7] ss:$0 sm:$0xff] }
0x1121   :  { %v1675_v25 = vmul.f32 %v2465_v42, %v1674_v41 }
0x1123   :  { %v1676_v17 = vadd.f32 %v2465_v42, %v1675_v25 }
0x1125   :  { %v1680_v7 = vsel %vm1679_vm10, %v2465_v42, %v1676_v17 }
0x1126   :  { %v1685_v45 = vsel %vm1682_vm12, %v1684_v47, %v1680_v7 }
0x1127   :  { %v3259_v10 = vmul.f32 %v1705_v28, %v1685_v45 }
0x1129   :  { %v1801_v55 = vrot.slane %v3259_v10, 6 }
0x117b   :  { %v1606_v31 = vpop.permute.xlu1 %1605 }
0x117c   :  { %v1608_v1 = vmul.f32 %v1606_v31, %v1589_v16 }
0x117e   :  { %v1709_v11 = vrot.slane %v1608_v1, 2 }
0x1180   :  { %1710 = vrot.lane.b32.xlu0 %v1709_v11, %s2512_s23 }
0x11f2   :  { %v1711_v44 = vpop.permute.xlu0 %1710 }
0x11f3   :  { %v1713_v54 = vsel %vm225_vm11, %v3259_v10, %v1711_v44 }
0x11f4   :  { %v1714_v35 = vpack.c.bf16 %v1713_v54, %v1713_v54 }
0x11f6   :  { %v1716_v34 = vrot.slane %v1714_v35, 3 }
0x11f8   :  { %1726 = vmatmul.bf16.vlgmr.msra.gmra.mxu2 %v1716_v34  ;;  %1739 = vmatmul.bf16.vlgmr.msra.gmra.mxu3 %v1716_v34 }
0x127b   :  { %v1727_v46 = vpop.f32.mrf.mxu2  ;;  %v1740_v56 = vpop.f32.mrf.mxu3 }
0x127c   :  { %v1741_v53 = vadd.f32 %v1740_v56, %v2934_v51  ;;  %v1728_v14 = vadd.f32 %v1727_v46, %v2941_v6 }
0x127e   :  { %2466 = vtanh.f32 %v1741_v53  ;;  %v2183_v9 = vmul.f32 -1.442695, %v1728_v14  ;;  %v2184_v19 = vmul.f32 -1.442695, %v1741_v53  ;;  %v2269_v53 = vld [vmem:[%s3353_s10 + $0x18] sm:$0xff] }
0x127f   :  { %1925 = vmatpush.bf16.msra.mxu1 %v2269_v53 }
0x1280   :  { %2468 = vpow2.f32 %v2183_v9 }
0x1283   :  { %v1729_v33 = vpop.f32.mrf.mxu2  ;;  %v1742_v43 = vpop.f32.mrf.mxu3 }
0x1284   :  { %v2467_v8 = vpop.eup %2466  ;;  %v2268_v33 = vld [vmem:[%s3353_s10 + $0x10] sm:$0xff]  ;;  %v2267_v43 = vld [vmem:[%s3353_s10 + $0x8] sm:$0xff] }
0x1285   :  { %1785 = vrot.lane.b32.xlu1 %v2467_v8, %s2512_s23  ;;  %1926 = vmatpush.bf16.msra.mxu1 %v2268_v33  ;;  %v2266_v8 = vld [vmem:[%s3353_s10] sm:$0xff] }
0x1286   :  { %v2469_v18 = vpop.eup %2468 }
0x1287   :  { %v1750_v21 = vadd.f32 1.0, %v2469_v18 }
0x1289   :  { %2470 = vrcp.f32 %v1750_v21  ;;  %v1763_v51 = vand.u32 2147483648, %v1750_v21  ;;  %vm1757_vm14 = vweird.f32 %v1750_v21  ;;  %v1761_v48 = vand.u32 2147483647, %v1750_v21  ;;  %1927 = vmatpush.bf16.msra.mxu1 %v2267_v43 }
0x128b   :  { %v1764_v58 = vor.u32 1.1754944e-38, %v1763_v51  ;;  %vm1762_vm1 = vcmp.eq.f32.partialorder %v1761_v48, 8.507059e+37  ;;  %v2280_v51 = vld [vmem:[%s3351_s8] ss:$0 sm:$0xff] }
0x128d   :  { %1928 = vmatpush.bf16.msra.mxu1 %v2266_v8 }
0x128f   :  { %v2471_v23 = vpop.eup %2470 }
0x1290   :  { %v1753_v29 = vmul.f32 %v2471_v23, %v1750_v21  ;;  %vm1758_vm13 = vweird.f32 %v2471_v23 }
0x1291   :  { %vm1759_vm15 = vmor %vm1757_vm14, %vm1758_vm13 }
0x1292   :  { %v1754_v30 = vsub.f32 1.0, %v1753_v29 }
0x1294   :  { %v1755_v36 = vmul.f32 %v2471_v23, %v1754_v30 }
0x1296   :  { %v1756_v37 = vadd.f32 %v2471_v23, %v1755_v36 }
0x1298   :  { %v1760_v50 = vsel %vm1759_vm15, %v2471_v23, %v1756_v37 }
0x1299   :  { %v1765_v6 = vsel %vm1762_vm1, %v1764_v58, %v1760_v50  ;;  %v2281_v58 = vld [vmem:[%s3352_s9] ss:$0 sm:$0xff] }
0x129a   :  { %v1783_v27 = vmul.f32 %v1765_v6, %v3253_v63 }
0x12f7   :  { %v1786_v2 = vpop.permute.xlu1 %1785 }
0x12f8   :  { %v1788_v4 = vmul.f32 %v1786_v2, %v1765_v6 }
0x12fa   :  { %1790 = vrot.lane.b32.xlu2 %v1788_v4, %s2512_s23 }
0x1354   :  { %v1791_v62 = vpop.permute.xlu2 %1790 }
0x1355   :  { %v1793_v57 = vadd.f32 %v1791_v62, %v1783_v27 }
0x1357   :  { %2472 = vtanh.f32 %v1793_v57 }
0x1358   :  { %2474 = vpow2.f32 %v2184_v19 }
0x135d   :  { %v2473_v61 = vpop.eup %2472 }
0x135e   :  { %1796 = vrot.lane.b32.xlu0 %v2473_v61, %s2512_s23  ;;  %v2475_v5 = vpop.eup %2474 }
0x135f   :  { %v1751_v24 = vadd.f32 1.0, %v2475_v5 }
0x1361   :  { %2476 = vrcp.f32 %v1751_v24  ;;  %v1778_v59 = vand.u32 2147483648, %v1751_v24  ;;  %vm1772_vm3 = vweird.f32 %v1751_v24  ;;  %v1776_v22 = vand.u32 2147483647, %v1751_v24 }
0x1362   :  { %2478 = vrcp.f32 %v2513_v0 }
0x1363   :  { %v1779_v16 = vor.u32 1.1754944e-38, %v1778_v59  ;;  %vm1777_vm5 = vcmp.eq.f32.partialorder %v1776_v22, 8.507059e+37  ;;  %v2270_v59 = vld [vmem:[%s3357_s14] sm:$0xff] }
0x1367   :  { %v2477_v12 = vpop.eup %2476 }
0x1368   :  { %v1768_v49 = vmul.f32 %v2477_v12, %v1751_v24  ;;  %vm1773_vm2 = vweird.f32 %v2477_v12  ;;  %v2479_v7 = vpop.eup %2478 }
0x1369   :  { %vm1774_vm4 = vmor %vm1772_vm3, %vm1773_vm2  ;;  %v1856_v47 = vmul.f32 64.0, %v2479_v7 }
0x136a   :  { %v1769_v32 = vsub.f32 1.0, %v1768_v49  ;;  %v2272_v49 = vld [vmem:[%s3357_s14 + $0x10] sm:$0xff] }
0x136b   :  { %v1857_v28 = vsub.f32 1.0, %v1856_v47  ;;  %v2285_v47 = vld [vmem:[%s3358_s15] ss:$0 sm:$0xff] }
0x136c   :  { %v1770_v63 = vmul.f32 %v2477_v12, %v1769_v32  ;;  %v2271_v32 = vld [vmem:[%s3357_s14 + $0x8] sm:$0xff] }
0x136d   :  { %v1858_v45 = vmul.f32 %v2479_v7, %v1857_v28 }
0x136e   :  { %v1771_v40 = vadd.f32 %v2477_v12, %v1770_v63 }
0x136f   :  { %v1859_v10 = vadd.f32 %v2479_v7, %v1858_v45 }
0x1370   :  { %v1775_v3 = vsel %vm1774_vm4, %v2477_v12, %v1771_v40  ;;  %v2273_v12 = vld [vmem:[%s3357_s14 + $0x18] sm:$0xff] }
0x1371   :  { %v1780_v31 = vsel %vm1777_vm5, %v1779_v16, %v1775_v3  ;;  %2001 = vmatpush.bf16.msrb.mxu0 %v2273_v12 }
0x1375   :  { %2002 = vmatpush.bf16.msrb.mxu0 %v2272_v49 }
0x1379   :  { %2003 = vmatpush.bf16.msrb.mxu0 %v2271_v32 }
0x137d   :  { %2004 = vmatpush.bf16.msrb.mxu0 %v2270_v59 }
0x13d0   :  { %v1797_v1 = vpop.permute.xlu0 %1796 }
0x13d1   :  { %v1799_v11 = vmul.f32 %v1797_v1, %v1780_v31 }
0x13d3   :  { %v1804_v39 = vrot.slane %v1799_v11, 6 }
0x13d5   :  { %v3283_v26 = vsel %vm142_vm0, %v1801_v55, %v1804_v39  ;;  %vm1860_vm0 = vweird.f32 %v2479_v7  ;;  %v2283_v39 = vld [vmem:[%s3355_s12] ss:$0 sm:$0xff]  ;;  %s2514_s12 = smov [#allocation2]  }
0x13d6   :  { %v1807_v42 = vpack.c.bf16 %v3283_v26, %v3283_v26  ;;  %v1861_v44 = vsel %vm1860_vm0, %v2479_v7, %v1859_v10  ;;  %s2016_s27 = sshll.u32 %s2514_s12, 4  ;;  %s2017_s27 = int_to_ptr.vmem [resolvable:$true] %s2016_s27 }
0x13d8   :  { %2201 = vmatmul.msk.bf16.vlgmr.msra.gmra.mxu0 %vm225_vm11, %v1807_v42 }
0x1455   :  { %v1847_v41 = vpop.f32.mrf.mxu0 }
0x1456   :  { %v1848_v25 = vadd.f32 %v2279_v38, %v1847_v41  ;;  %v2284_v38 = vld [vmem:[%s3356_s13] ss:$0 sm:$0xff] }
0x1458   :  { %v1852_v17 = vsel %vm1851_vm6, %v1848_v25, 0.0 }
0x1459   :  { %1853 = vadd.xlane.f32.xlu1 %v1852_v17 }
0x145d   :  { %v1849_v20 = vpop.f32.mrf.mxu0 }
0x14cc   :  { %v1854_v54 = vpop.xlane.xlu1 %1853 }
0x14cd   :  { %v1862_v35 = vmul.f32 %v1861_v44, %v1854_v54 }
0x14cf   :  { %v1863_v34 = vsub.f32 %v1848_v25, %v1862_v35 }
0x14d1   :  { %v1864_v46 = vmul.f32 %v1863_v34, %v1863_v34 }
0x14d3   :  { %v1865_v56 = vsel %vm1851_vm6, %v1864_v46, 0.0 }
0x14d4   :  { %1866 = vadd.xlane.f32.xlu2 %v1865_v56 }
0x1547   :  { %v1867_v14 = vpop.xlane.xlu2 %1866 }
0x1548   :  { %v1868_v9 = vmul.f32 %v1867_v14, %v1861_v44 }
0x154a   :  { %v1869_v18 = vadd.f32 1e-05, %v1868_v9 }
0x154c   :  { %2480 = vrsqrt.f32 %v1869_v18  ;;  %vm1876_vm8 = vweird.f32 %v1869_v18 }
0x1552   :  { %v2481_v21 = vpop.eup %2480 }
0x1553   :  { %v1871_v23 = vmul.f32 %v2481_v21, %v1869_v18  ;;  %vm1877_vm7 = vweird.f32 %v2481_v21 }
0x1554   :  { %vm1878_vm9 = vmor %vm1876_vm8, %vm1877_vm7 }
0x1555   :  { %v1872_v29 = vmul.f32 %v2481_v21, %v1871_v23 }
0x1557   :  { %v1873_v30 = vmul.f32 0.5, %v1872_v29 }
0x1559   :  { %v1874_v36 = vsub.f32 1.5, %v1873_v30 }
0x155b   :  { %v1875_v37 = vmul.f32 %v2481_v21, %v1874_v36 }
0x155d   :  { %v1879_v48 = vsel %vm1878_vm9, %v2481_v21, %v1875_v37 }
0x155e   :  { %v1880_v50 = vmul.f32 %v1879_v48, %v1863_v34 }
0x1560   :  { %v1884_v2 = vmul.f32 %v2280_v51, %v1880_v50 }
0x1562   :  { %v1888_v6 = vadd.f32 %v2281_v58, %v1884_v2 }
0x1564   :  { %v1889_v4 = vmax.f32 %v1888_v6, 0.0 }
0x1566   :  { %v1890_v13 = vpack.c.bf16 %v1889_v4, %v1889_v4 }
0x1568   :  { %2218 = vmatmul.msk.bf16.vlgmr.msra.gmra.mxu1 %vm225_vm11, %v1890_v13 }
0x15e5   :  { %v1930_v52 = vpop.f32.mrf.mxu1 }
0x15e6   :  { %v1931_v27 = vadd.f32 %v2282_v15, %v1930_v52 }
0x15e8   :  { %v1934_v62 = vsel %vm1851_vm6, %v1931_v27, 0.0 }
0x15e9   :  { %1935 = vadd.xlane.f32.xlu0 %v1934_v62 }
0x15ed   :  { %v1932_v57 = vpop.f32.mrf.mxu1 }
0x165c   :  { %v1936_v61 = vpop.xlane.xlu0 %1935 }
0x165d   :  { %v1937_v19 = vmul.f32 %v1936_v61, %v1861_v44 }
0x165f   :  { %v1938_v5 = vsub.f32 %v1931_v27, %v1937_v19 }
0x1661   :  { %v1939_v24 = vmul.f32 %v1938_v5, %v1938_v5 }
0x1663   :  { %v1940_v60 = vsel %vm1851_vm6, %v1939_v24, 0.0 }
0x1664   :  { %1941 = vadd.xlane.f32.xlu2 %v1940_v60 }
0x16d7   :  { %v1942_v63 = vpop.xlane.xlu2 %1941 }
0x16d8   :  { %v1943_v40 = vmul.f32 %v1942_v63, %v1861_v44 }
0x16da   :  { %v1944_v22 = vadd.f32 1e-05, %v1943_v40 }
0x16dc   :  { %2482 = vrsqrt.f32 %v1944_v22  ;;  %vm1951_vm12 = vweird.f32 %v1944_v22 }
0x16e2   :  { %v2483_v3 = vpop.eup %2482 }
0x16e3   :  { %v1946_v16 = vmul.f32 %v2483_v3, %v1944_v22  ;;  %vm1952_vm10 = vweird.f32 %v2483_v3 }
0x16e4   :  { %vm1953_vm13 = vmor %vm1951_vm12, %vm1952_vm10 }
0x16e5   :  { %v1947_v31 = vmul.f32 %v2483_v3, %v1946_v16 }
0x16e7   :  { %v1948_v1 = vmul.f32 0.5, %v1947_v31 }
0x16e9   :  { %v1949_v11 = vsub.f32 1.5, %v1948_v1 }
0x16eb   :  { %v1950_v55 = vmul.f32 %v2483_v3, %v1949_v11 }
0x16ed   :  { %v1954_v42 = vsel %vm1953_vm13, %v2483_v3, %v1950_v55 }
0x16ee   :  { %v1955_v41 = vmul.f32 %v1954_v42, %v1938_v5 }
0x16f0   :  { %v1959_v25 = vmul.f32 %v2283_v39, %v1955_v41 }
0x16f2   :  { %v1963_v17 = vadd.f32 %v2284_v38, %v1959_v25 }
0x16f4   :  { %v1964_v20 = vmax.f32 %v1963_v17, 0.0 }
0x16f6   :  { %v1965_v0 = vadd.f32 %v1964_v20, %v3283_v26 }
0x16f8   :  { %v1966_v7 = vpack.c.bf16 %v1965_v0, %v1965_v0 }
0x16fa   :  { %2235 = vmatmul.msk.bf16.vlgmr.msrb.gmra.mxu0 %vm225_vm11, %v1966_v7 }
0x1777   :  { %v2006_v28 = vpop.f32.mrf.mxu0 }
0x1778   :  { %v2007_v45 = vadd.f32 %v2285_v47, %v2006_v28 }
0x177a   :  { %2010 = vst [vmem:[#allocation2] sm:$0xf] %v2007_v45 }
0x177b   :  { %2021 = dma.vmem_to_hbm [thread:$0]  %s2017_s27, 64, %s2019_s30, [#allocation3]  }
0x177f   :  { %v2008_v26 = vpop.f32.mrf.mxu0 }
0x1780   :  { %2508 = dma.done.wait [#allocation3], 64  }
0x1781   :  { %2509 = vsyncadd [#allocation3], 4294967232 }
0x1782   :  { %2026 = vsyncpa [#allocation3], 1 }

</bundles_post_ra>
